<compile_context>
chip_gen: v5e
topology: v5e:2x2
jax: 0.10.0
libtpu: 0.0.40
codegen_flags: <defaults>
</compile_context>

<pallas_src>
import functools

import jax
import jax.numpy as jnp
from jax.experimental import pallas as pl
from jax.experimental.pallas import tpu as pltpu


def _round_up(x, m):
    return ((x + m - 1) // m) * m


def _cdiv(a, b):
    return -(-a // b)


def _device_vmem_bytes():
    """Physical VMEM per TensorCore; conservative (v7x-sized) fallback."""
    try:
        return int(pltpu.get_tpu_info().vmem_capacity_bytes)
    except Exception:
        return 64 * 1024 * 1024


# ---------------------------------------------------------------------------
# Kernels
# ---------------------------------------------------------------------------
def _ffn_kernel_acc_in_out(x_ref, w1_ref, b1_ref, w2_ref, b2_ref, o_ref):
    """f32 output: accumulate directly into the resident output block."""
    k = pl.program_id(1)

    # First linear chunk + ReLU: (tm, C) @ (C, th) on the MXU, f32 accumulate.
    h = jnp.dot(x_ref[...], w1_ref[...], preferred_element_type=jnp.float32)
    h = jnp.maximum(h + b1_ref[...], 0.0)          # bias + ReLU on the VPU

    # Second linear chunk: (tm, th) @ (th, C).  h is intentionally downcast to
    # the weight dtype (bf16) for the MXU.
    partial = jnp.dot(h.astype(w2_ref.dtype), w2_ref[...],
                      preferred_element_type=jnp.float32)

    @pl.when(k == 0)
    def _():
        o_ref[...] = partial

    @pl.when(k != 0)
    def _():
        o_ref[...] += partial

    @pl.when(k == pl.num_programs(1) - 1)
    def _():
        o_ref[...] += b2_ref[...]


def _ffn_kernel_scratch(x_ref, w1_ref, b1_ref, w2_ref, b2_ref, o_ref, acc_ref):
    """Non-f32 output: f32 VMEM accumulator, cast on the final hidden step."""
    k = pl.program_id(1)

    @pl.when(k == 0)
    def _():
        acc_ref[...] = jnp.zeros_like(acc_ref)

    h = jnp.dot(x_ref[...], w1_ref[...], preferred_element_type=jnp.float32)
    h = jnp.maximum(h + b1_ref[...], 0.0)
    acc_ref[...] += jnp.dot(h.astype(w2_ref.dtype), w2_ref[...],
                            preferred_element_type=jnp.float32)

    @pl.when(k == pl.num_programs(1) - 1)
    def _():
        o_ref[...] = (acc_ref[...] + b2_ref[...]).astype(o_ref.dtype)


# ---------------------------------------------------------------------------
# One-time parameter preparation (hoisted out of the per-forward path)
# ---------------------------------------------------------------------------
def prepare_ffn_params(w1, b1, w2, b2, *, tile_h=512,
                       compute_dtype=jnp.bfloat16):
    """Cast weights to the MXU dtype, pad the hidden dim, make biases 2-D.

    Doing this once (outside the jitted forward) avoids writing a full padded
    bf16 copy of both weight matrices to HBM on every call.
    """
    C, H = w1.shape
    th = min(tile_h, _round_up(H, 128))
    H_p = _round_up(H, th)

    w1c = w1.astype(compute_dtype)
    w2c = w2.astype(compute_dtype)
    b1f = b1.astype(jnp.float32)
    b2f = b2.astype(jnp.float32)
    if H_p != H:
        # Zero padding on the hidden dim is exact: relu(0 + 0) @ 0 == 0.
        w1c = jnp.pad(w1c, ((0, 0), (0, H_p - H)))
        b1f = jnp.pad(b1f, ((0, H_p - H),))
        w2c = jnp.pad(w2c, ((0, H_p - H), (0, 0)))
    return w1c, b1f.reshape(1, H_p), w2c, b2f.reshape(1, C)


# ---------------------------------------------------------------------------
# Forward
# ---------------------------------------------------------------------------
@functools.partial(
    jax.jit,
    static_argnames=("tile_m", "tile_h", "compute_dtype", "out_dtype"))
def feedforward(x, w1, b1, w2, b2, *, tile_m=None, tile_h=512,
                compute_dtype=jnp.bfloat16, out_dtype=None):
    """x: (B, T, C).  w1: (C, H), b1: (H,) or (1, H), w2: (H, C), b2: (C,) or (1, C).

    Pass weights through `prepare_ffn_params` once; the casts/pads below then
    become XLA no-ops and no per-call weight copy is made.
    """
    B, T, C = x.shape
    H = w1.shape[1]
    rows = B * T

    out_dtype = jnp.dtype(x.dtype if out_dtype is None else out_dtype)
    in_bytes = jnp.dtype(compute_dtype).itemsize
    out_bytes = out_dtype.itemsize
    use_scratch = out_dtype != jnp.dtype(jnp.float32)

    # --- generation-aware VMEM budget --------------------------------------
    vmem_cap = _device_vmem_bytes()                     # 64 MiB v7x, 128 MiB v5e/v6e
    vmem_limit = min(int(vmem_cap * 0.85), 112 * 1024 * 1024)

    # --- row tile: even split, bounded padding, >=2 tiles when possible ----
    if tile_m is None:
        tile_m = 512        # enough weight reuse per slab to be MXU-bound on v6e
    n_tiles = max(1, _cdiv(rows, tile_m))
    if rows >= 16:
        n_tiles = max(n_tiles, 2)   # both v7x TensorCores get work
    tm = _round_up(_cdiv(rows, n_tiles), 8)

    # --- hidden tile (lane aligned); shrink tiles if VMEM budget exceeded ---
    th = min(tile_h, _round_up(H, 128))

    def budget(tm_, th_):
        b = 2 * tm_ * C * in_bytes                 # x, double-buffered
        b += 2 * (C * th_ + th_ * C) * in_bytes    # W1/W2 slabs, double-buffered
        b += 2 * (th_ + C) * 4                     # biases
        b += 2 * tm_ * C * out_bytes               # out, double-buffered
        if use_scratch:
            b += tm_ * C * 4                       # f32 accumulator
        return b

    while budget(tm, th) > int(0.75 * vmem_limit):
        if th > 256:
            th //= 2
        elif tm > 64:
            tm = _round_up(tm // 2, 8)
        else:
            break

    rows_p = _round_up(rows, tm)
    H_p = _round_up(H, th)

    # --- operand prep (no-ops if prepare_ffn_params was used) --------------
    x2d = x.reshape(rows, C).astype(compute_dtype)
    if rows_p != rows:
        x2d = jnp.pad(x2d, ((0, rows_p - rows), (0, 0)))

    w1c = w1.astype(compute_dtype)
    w2c = w2.astype(compute_dtype)
    b1f = b1.reshape(1, -1).astype(jnp.float32)
    b2f = b2.reshape(1, -1).astype(jnp.float32)
    if w1c.shape[1] != H_p:
        pad = H_p - w1c.shape[1]
        w1c = jnp.pad(w1c, ((0, 0), (0, pad)))
        b1f = jnp.pad(b1f, ((0, 0), (0, pad)))
        w2c = jnp.pad(w2c, ((0, pad), (0, 0)))

    grid = (rows_p // tm, H_p // th)                 # rows parallel, H reduce
    n_row_tiles = grid[0]

    flops = 2 * rows_p * C * H_p * 2                 # two matmuls
    bytes_accessed = int(
        rows_p * C * in_bytes                        # x
        + n_row_tiles * 2 * C * H_p * in_bytes       # W1+W2 re-streamed per row tile
        + (H_p + C) * 4                              # biases
        + rows_p * C * out_bytes)                    # output writeback

    kernel = _ffn_kernel_scratch if use_scratch else _ffn_kernel_acc_in_out
    scratch = [pltpu.VMEM((tm, C), jnp.float32)] if use_scratch else []

    out2d = pl.pallas_call(
        kernel,
        out_shape=jax.ShapeDtypeStruct((rows_p, C), out_dtype),
        grid_spec=pltpu.PrefetchScalarGridSpec(
            num_scalar_prefetch=0,
            grid=grid,
            in_specs=[
                pl.BlockSpec((tm, C), lambda i, k: (i, 0)),   # x row tile
                pl.BlockSpec((C, th), lambda i, k: (0, k)),   # W1 hidden slab
                pl.BlockSpec((1, th), lambda i, k: (0, k)),   # b1 hidden slab
                pl.BlockSpec((th, C), lambda i, k: (k, 0)),   # W2 hidden slab
                pl.BlockSpec((1, C), lambda i, k: (0, 0)),    # b2
            ],
            out_specs=pl.BlockSpec((tm, C), lambda i, k: (i, 0)),
            scratch_shapes=scratch,
        ),
        compiler_params=pltpu.CompilerParams(
            dimension_semantics=("parallel", "arbitrary"),
            vmem_limit_bytes=vmem_limit,
        ),
        cost_estimate=pl.CostEstimate(
            flops=flops, transcendentals=0, bytes_accessed=bytes_accessed),
    )(x2d, w1c, b1f, w2c, b2f)

    # Eval-mode dropout == identity.
    return out2d[:rows].reshape(B, T, C)


def init_params(key, n_embd, dtype=jnp.float32):
    """Deterministic PyTorch-style init: U(-1/sqrt(fan_in), 1/sqrt(fan_in))."""
    hidden = 4 * n_embd
    k1, k2, k3, k4 = jax.random.split(key, 4)
    bound1 = 1.0 / jnp.sqrt(n_embd)
    bound2 = 1.0 / jnp.sqrt(hidden)
    w1 = jax.random.uniform(k1, (n_embd, hidden), dtype, -bound1, bound1)
    b1 = jax.random.uniform(k2, (hidden,), dtype, -bound1, bound1)
    w2 = jax.random.uniform(k3, (hidden, n_embd), dtype, -bound2, bound2)
    b2 = jax.random.uniform(k4, (n_embd,), dtype, -bound2, bound2)
    return w1, b1, w2, b2


if __name__ == "__main__":
    # Small shapes consistent with the module: batch=2, seq=8, n_embd=384.
    B, T, n_embd = 2, 8, 384

    key = jax.random.PRNGKey(0)
    kx, kp = jax.random.split(key)
    x = jax.random.normal(kx, (B, T, n_embd), jnp.float32)
    w1, b1, w2, b2 = init_params(kp, n_embd)

    # One-time weight prep (bf16 cast + padding) hoisted out of the forward.
    w1p, b1p, w2p, b2p = jax.block_until_ready(
        prepare_ffn_params(w1, b1, w2, b2))

    out = feedforward(x, w1p, b1p, w2p, b2p)
    jax.block_until_ready(out)

    # Reference check in plain JAX (eval-mode forward, f32).
    ref = jnp.maximum(x.reshape(-1, n_embd) @ w1 + b1, 0.0) @ w2 + b2
    ref = ref.reshape(B, T, n_embd)
    assert out.shape == (B, T, n_embd)
    assert out.dtype == x.dtype
    # bf16 MXU operands (and bf16 h) with f32 accumulation -> loosened
    # tolerance vs the f32 reference.
    assert jnp.allclose(out, ref, atol=3e-2, rtol=3e-2), (
        float(jnp.max(jnp.abs(out - ref))))

    print("KERNEL_OK")
</pallas_src>

<mosaic_0001>
module attributes {stable_mosaic.version = 11 : i64} {
  func.func @_ffn_kernel_acc_in_out(%arg0: i32, %arg1: i32, %arg2: memref<8x384xbf16, #tpu.memory_space<vmem>>, %arg3: memref<384x512xbf16, #tpu.memory_space<vmem>>, %arg4: memref<1x512xf32, #tpu.memory_space<vmem>>, %arg5: memref<512x384xbf16, #tpu.memory_space<vmem>>, %arg6: memref<1x384xf32, #tpu.memory_space<vmem>>, %arg7: memref<8x384xf32, #tpu.memory_space<vmem>>) attributes {dimension_semantics = [#tpu.dimension_semantics<parallel>, #tpu.dimension_semantics<arbitrary>], iteration_bounds = array<i64: 2, 3>, scalar_prefetch = 0 : i64, scratch_operands = 0 : i64, tpu.core_type = #tpu.core_type<tc>, window_params = [{transform_indices = @transform_0, window_bounds = array<i64: 8, 384>}, {transform_indices = @transform_1, window_bounds = array<i64: 384, 512>}, {transform_indices = @transform_2, window_bounds = array<i64: 1, 512>}, {transform_indices = @transform_3, window_bounds = array<i64: 512, 384>}, {pipeline_mode = #tpu.pipeline_mode<synchronous>, transform_indices = @transform_4, window_bounds = array<i64: 1, 384>}, {transform_indices = @transform_5, window_bounds = array<i64: 8, 384>}]} {
    %c0 = arith.constant 0 : index
    %c0_0 = arith.constant 0 : index
    %0 = vector.load %arg2[%c0, %c0_0] : memref<8x384xbf16, #tpu.memory_space<vmem>>, vector<8x384xbf16>
    %c0_1 = arith.constant 0 : index
    %c0_2 = arith.constant 0 : index
    %1 = vector.load %arg3[%c0_1, %c0_2] : memref<384x512xbf16, #tpu.memory_space<vmem>>, vector<384x512xbf16>
    %cst = arith.constant dense<0.000000e+00> : vector<8x512xf32>
    %2 = tpu.matmul %0, %1, %cst {dimension_numbers = #tpu.dot_dimension_numbers<[1], [0], [0], [1], [0, 0, 1, 1], [], []>} : vector<8x384xbf16>, vector<384x512xbf16>, vector<8x512xf32> -> vector<8x512xf32>
    %c0_3 = arith.constant 0 : index
    %c0_4 = arith.constant 0 : index
    %3 = vector.load %arg4[%c0_3, %c0_4] : memref<1x512xf32, #tpu.memory_space<vmem>>, vector<1x512xf32>
    %4 = vector.broadcast %3 : vector<1x512xf32> to vector<8x512xf32>
    %5 = arith.addf %2, %4 : vector<8x512xf32>
    %cst_5 = arith.constant 0.000000e+00 : f32
    %6 = vector.broadcast %cst_5 : f32 to vector<8x512xf32>
    %7 = arith.maximumf %5, %6 : vector<8x512xf32>
    %8 = arith.truncf %7 : vector<8x512xf32> to vector<8x512xbf16>
    %c0_6 = arith.constant 0 : index
    %c0_7 = arith.constant 0 : index
    %9 = vector.load %arg5[%c0_6, %c0_7] : memref<512x384xbf16, #tpu.memory_space<vmem>>, vector<512x384xbf16>
    %cst_8 = arith.constant dense<0.000000e+00> : vector<8x384xf32>
    %10 = tpu.matmul %8, %9, %cst_8 {dimension_numbers = #tpu.dot_dimension_numbers<[1], [0], [0], [1], [0, 0, 1, 1], [], []>} : vector<8x512xbf16>, vector<512x384xbf16>, vector<8x384xf32> -> vector<8x384xf32>
    %c0_i32 = arith.constant 0 : i32
    %11 = arith.cmpi eq, %arg1, %c0_i32 : i32
    %12 = arith.extui %11 : i1 to i32
    %c0_i32_9 = arith.constant 0 : i32
    %13 = arith.cmpi ne, %12, %c0_i32_9 : i32
    scf.if %13 {
      %c0_13 = arith.constant 0 : index
      %c0_14 = arith.constant 0 : index
      %20 = vector.load %arg7[%c0_13, %c0_14] : memref<8x384xf32, #tpu.memory_space<vmem>>, vector<8x384xf32>
      tpu.vector_store %arg7[%c0_13, %c0_14], %10 {strides = array<i32>} : memref<8x384xf32, #tpu.memory_space<vmem>>, vector<8x384xf32>,
    } else {
    }
    %c0_i32_10 = arith.constant 0 : i32
    %14 = arith.cmpi ne, %arg1, %c0_i32_10 : i32
    %15 = arith.extui %14 : i1 to i32
    %c0_i32_11 = arith.constant 0 : i32
    %16 = arith.cmpi ne, %15, %c0_i32_11 : i32
    scf.if %16 {
      %c0_13 = arith.constant 0 : index
      %c0_14 = arith.constant 0 : index
      %20 = vector.load %arg7[%c0_13, %c0_14] : memref<8x384xf32, #tpu.memory_space<vmem>>, vector<8x384xf32>
      %21 = arith.addf %20, %10 : vector<8x384xf32>
      %c0_15 = arith.constant 0 : index
      %c0_16 = arith.constant 0 : index
      %22 = vector.load %arg7[%c0_15, %c0_16] : memref<8x384xf32, #tpu.memory_space<vmem>>, vector<8x384xf32>
      tpu.vector_store %arg7[%c0_15, %c0_16], %21 {strides = array<i32>} : memref<8x384xf32, #tpu.memory_space<vmem>>, vector<8x384xf32>,
    } else {
    }
    %c2_i32 = arith.constant 2 : i32
    %17 = arith.cmpi eq, %arg1, %c2_i32 : i32
    %18 = arith.extui %17 : i1 to i32
    %c0_i32_12 = arith.constant 0 : i32
    %19 = arith.cmpi ne, %18, %c0_i32_12 : i32
    scf.if %19 {
      %c0_13 = arith.constant 0 : index
      %c0_14 = arith.constant 0 : index
      %20 = vector.load %arg7[%c0_13, %c0_14] : memref<8x384xf32, #tpu.memory_space<vmem>>, vector<8x384xf32>
      %c0_15 = arith.constant 0 : index
      %c0_16 = arith.constant 0 : index
      %21 = vector.load %arg6[%c0_15, %c0_16] : memref<1x384xf32, #tpu.memory_space<vmem>>, vector<1x384xf32>
      %22 = vector.broadcast %21 : vector<1x384xf32> to vector<8x384xf32>
      %23 = arith.addf %20, %22 : vector<8x384xf32>
      %c0_17 = arith.constant 0 : index
      %c0_18 = arith.constant 0 : index
      %24 = vector.load %arg7[%c0_17, %c0_18] : memref<8x384xf32, #tpu.memory_space<vmem>>, vector<8x384xf32>
      tpu.vector_store %arg7[%c0_17, %c0_18], %23 {strides = array<i32>} : memref<8x384xf32, #tpu.memory_space<vmem>>, vector<8x384xf32>,
    } else {
    }
    return
  }
  func.func @transform_0(%arg0: i32, %arg1: i32) -> (i32, i32) {
    %c0_i32 = arith.constant 0 : i32
    %c0_i32_0 = arith.constant 0 : i32
    return %arg0, %c0_i32 : i32, i32
  }
  func.func @transform_1(%arg0: i32, %arg1: i32) -> (i32, i32) {
    %c0_i32 = arith.constant 0 : i32
    %c0_i32_0 = arith.constant 0 : i32
    return %c0_i32, %arg1 : i32, i32
  }
  func.func @transform_2(%arg0: i32, %arg1: i32) -> (i32, i32) {
    %c0_i32 = arith.constant 0 : i32
    %c0_i32_0 = arith.constant 0 : i32
    return %c0_i32, %arg1 : i32, i32
  }
  func.func @transform_3(%arg0: i32, %arg1: i32) -> (i32, i32) {
    %c0_i32 = arith.constant 0 : i32
    %c0_i32_0 = arith.constant 0 : i32
    return %arg1, %c0_i32 : i32, i32
  }
  func.func @transform_4(%arg0: i32, %arg1: i32) -> (i32, i32) {
    %c0_i32 = arith.constant 0 : i32
    %c0_i32_0 = arith.constant 0 : i32
    %c0_i32_1 = arith.constant 0 : i32
    return %c0_i32, %c0_i32_0 : i32, i32
  }
  func.func @transform_5(%arg0: i32, %arg1: i32) -> (i32, i32) {
    %c0_i32 = arith.constant 0 : i32
    %c0_i32_0 = arith.constant 0 : i32
    return %arg0, %c0_i32 : i32, i32
  }
}

</mosaic_0001>

<bundles_post_ra>
// kernel: feedforward.1
= control target key start
LH: loop header
LB: loop body
LE: loop exit
PB: predicated region body
PF: predicated region fallthrough
CT: control target
= control target key end

     0   :  { %s4242_s0 = inlined_call_operand.vmem [shape: bf16[16,384], index: 0, kind: input, shape index: {}]   ;;  %s4243_s1 = inlined_call_operand.hbm [shape: bf16[384,1536], index: 1, kind: input, shape index: {}]   ;;  %s4244_s2 = inlined_call_operand.hbm [shape: f32[1,1536], index: 2, kind: input, shape index: {}]   ;;  %s4245_s3 = inlined_call_operand.hbm [shape: bf16[1536,384], index: 3, kind: input, shape index: {}]   ;;  %s4246_s4 = inlined_call_operand.hbm [shape: f32[1,384], index: 4, kind: input, shape index: {}]   ;;  %s4247_s5 = inlined_call_operand.hbm [shape: f32[16,384], index: 5, kind: output, shape index: {}]  }
   0x1   :  { %4260 = sst [smem:[#allocation27_spill]] %s4244_s2 }
   0x2   :  { %4261 = sst [smem:[#allocation28_spill]] %s4246_s4 }
   0x3   :  { %4262 = sst [smem:[#allocation29_spill]] %s4247_s5 }
   0x4   :  { %10 = vsyncpa [#allocation3], 0 }
   0x5   :  { %12 = vsyncpa [#allocation3 + $0x1], 0 }
   0x6   :  { %13 = vsyncpa [#allocation6], 0 }
   0x7   :  { %15 = vsyncpa [#allocation6 + $0x1], 0 }
   0x8   :  { %16 = vsyncpa [#allocation9], 0 }
   0x9   :  { %17 = vsyncpa [#allocation4], 0 }
   0xa   :  { %19 = vsyncpa [#allocation4 + $0x1], 0  ;;  %s3543_s18 = smov 0   ;;  %s3545_s19 = smov 0  }
   0xb   :  { %s3547_s20 = smov 0   ;;  %s3549_s21 = smov 0  }
   0xc   :  { %s3551_s22 = smov 0   ;;  %s3553_s23 = smov 0  }
   0xd   :  { %s3555_s24 = smov 0   ;;  %s3557_s25 = smov 0  }
   0xe   :  { %s3559_s26 = smov 0   ;;  %s3561_s27 = smov 0  }
   0xf   :  { %s3563_s28 = smov 0  }
  0x10 LB: > { %4263 = sst [smem:[#allocation15_spill]] %s3465_s18  ;;  %s34_s29 = sadd.s32 1, %s3497_s26  ;;  %s3505_s28 = sphi %s3563_s28, %s25_s28   ;;  %s3501_s27 = sphi %s3561_s27, %s4297_s27   ;;  %s3497_s26 = sphi %s3559_s26, %s4303_s26   ;;  %s3493_s25 = sphi %s3557_s25, %s4295_s25   ;;  %s3489_s24 = sphi %s3555_s24, %s4302_s24   ;;  %s3485_s23 = sphi %s3553_s23, %s4294_s23   ;;  %s3481_s22 = sphi %s3551_s22, %s4301_s22   ;;  %s3477_s21 = sphi %s3549_s21, %s4300_s21   ;;  %s3473_s20 = sphi %s3547_s20, %s4292_s20   ;;  %s3469_s19 = sphi %s3545_s19, %s4299_s19   ;;  %s3465_s18 = sphi %s3543_s18, %s4298_s18  }
  0x11   : > { %4264 = sst [smem:[#allocation16_spill]] %s3473_s20  ;;  %s37_s30 = sadd.s32 1, %s3501_s27 }
  0x12   : > { %4265 = sst [smem:[#allocation17_spill]] %s3485_s23  ;;  %p35_p0 = scmp.ge.s32.totalorder %s34_s29, 3 }
  0x13   : > { %4266 = sst [smem:[#allocation18_spill]] %s3489_s24  ;;  %s70_s6 = sadd.s32 1, %s3485_s23 }
  0x14   : > { %4267 = sst [smem:[#allocation19_spill]] %s3501_s27  ;;  %p77_p1 = scmp.ne.s32.totalorder %s3485_s23, %s3481_s22 }
  0x15   : > { %4268 = sst [smem:[#allocation20_spill]] %s3505_s28  ;;  %p78_p2 = scmp.eq.s32.totalorder %s3505_s28, 0 }
  0x16   : > { %s4305_s29 = smov (%p35_p0, %s34_s29), 0  ;;  %s4307_s30 = smov (!%p35_p0, %s37_s30), %s3501_s27 }
  0x17   : > { %4269 = sst [smem:[#allocation21_spill]] %s4305_s29  ;;  %s67_s7 = ssub.s32 %s3497_s26, %s4305_s29 }
  0x18   : > { %p79_p3 = por %p78_p2, %p77_p1  ;;  %p39_p4 = scmp.ge.s32.totalorder %s4307_s30, 2 }
  0x19   : > { %p68_p5 = scmp.eq.s32.totalorder %s67_s7, 0  ;;  %p3158_p6 = scmp.lt.s32.totalorder %s3505_s28, 6 }
  0x1a   : > { %s4309_s30 = smov (%p39_p4, %s4307_s30), 0  ;;  %s3616_s9 = sand.u32 1, %s3485_s23  }
  0x1b   : > { %4270 = sst [smem:[#allocation22_spill]] %s4309_s30  ;;  %p3618_p7 = pnand %p3158_p6, %p79_p3 }
  0x1c   : > { %s3613_s8 = scalar_select %p68_p5, %s3485_s23, %s70_s6  }
  0x1d   : > { %s3120_s11 = smul.u32 768, %s3616_s9  ;;  %s248_s12 = sand.u32 1, %s3505_s28  }
  0x1e   : > { %4271 = sst [smem:[#allocation23_spill]] %s3613_s8  ;;  %s2144_s13 = sshll.u32 %s3616_s9, 2 }
  0x1f   : > { %s230_s14 = scalar_lea.vmem [#allocation2], %s3120_s11  ;;  %s2145_s16 = sshll.u32 %s3497_s26, 2 }
  0x20   : > { %s238_s15 = sshll.u32 %s230_s14, 4  ;;  %s252_s17 = scalar_lea.vmem [#allocation5], %s2144_s13  ;;  %s3629_s15 = int_to_ptr.vmem [resolvable:$true] %s238_s15 }
  0x21   : > { %s260_s6 = sshll.u32 %s252_s17, 4  ;;  %s4273_s2 = sld [smem:[#allocation27_spill]]  ;;  %s261_s6 = int_to_ptr.vmem [resolvable:$true] %s260_s6 }
  0x22   : > { %s3631_s14 = scalar_lea.sflag [#allocation6], %s248_s12  ;;  %s3636_s13 = scalar_lea.vmem [#allocation7], %s3120_s11 }
  0x23   : > { %p83_p8 = scmp.ne.s32.totalorder %s3481_s22, %s3477_s21  ;;  %s166_s17 = ssub.s32 %s3501_s27, %s4309_s30 }
  0x24   : > { %p167_p10 = scmp.eq.s32.totalorder %s166_s17, 0  ;;  %s169_s12 = sadd.s32 1, %s3473_s20 }
  0x25   : > { %p179_p12 = scmp.ne.s32.totalorder %s3473_s20, %s3469_s19  ;;  %p185_p0 = scmp.ne.s32.totalorder %s3469_s19, %s3465_s18 }
  0x26   : > { %s3658_s11 = scalar_select %p167_p10, %s3473_s20, %s169_s12  }
  0x27   : > { %s256_s8 = scalar_lea.hbm %s4273_s2, %s2145_s16  ;;  %s3640_s16 = sadd.s32 4294967295, %s3505_s28  }
  0x28   : > { %s258_s23 = sshll.u32 %s256_s8, 4  ;;  %s2138_s8 = sadd.s32 4294967294, %s3505_s28   ;;  %s259_s23 = int_to_ptr.hbm [resolvable:$true] %s258_s23 }
  0x29   : > { %3149 = dma.hbm_to_vmem [thread:$0]  (!%p3618_p7), %s259_s23, 64, %s261_s6, %s3631_s14  }
  0x2a   : > { %p84_p9 = scmp.eq.s32.totalorder %s3640_s16, 0  ;;  %4275 = sst [smem:[#allocation24_spill]] %s3658_s11 }
  0x2b   : > { %p180_p13 = scmp.eq.s32.totalorder %s3640_s16, 5  ;;  %p186_p1 = scmp.eq.s32.totalorder %s2138_s8, 5 }
  0x2c   : > { %p3651_p11 = por %p84_p9, %p83_p8  ;;  %p2139_p2 = scmp.ge.s32.totalorder %s3505_s28, 1 }
  0x2d   : > { %p3664_p3 = por %p180_p13, %p179_p12  ;;  %p193_p4 = scmp.lt.s32.totalorder %s3505_s28, 7 }
  0x2e   : > { %p3669_p5 = por %p186_p1, %p185_p0  ;;  %s4281_s4 = sld [smem:[#allocation28_spill]] }
  0x2f   : > { %s4276_s21 = scalar_select %p3664_p3, 1, 0 }
  0x30   : > { %s4278_s6 = scalar_select %p3669_p5, 1, 0 }
  0x31   : > { %4277 = sst [smem:[#allocation25_spill]] %s4276_s21  ;;  %p3673_p6 = pnand %p2139_p2, %p193_p4 }
  0x32   : > { %4279 = sst [smem:[#allocation26_spill]] %s4278_s6  ;;  %s3507_s29 = smov [#allocation8]  }
  0x33   : > { %p3139_p8 = pneg %p3673_p6  ;;  %s207_s2 = sshll.u32 %s3507_s29, 4  ;;  %s208_s2 = int_to_ptr.vmem [resolvable:$true] %s207_s2 }
  0x34   : > { %s205_s8 = sshll.u32 %s4281_s4, 4  ;;  %s2927_s30 = sshll.u32 %s3497_s26, 4  ;;  %s206_s8 = int_to_ptr.hbm [resolvable:$true] %s205_s8 }
  0x35   : > { %p3140_p10 = pnand %p3139_p8, %p84_p9  ;;  %s235_s20 = scalar_lea.hbm %s4243_s1, %s2927_s30 }
  0x36   : > { %s236_s17 = sshll.u32 %s235_s20, 4  ;;  %s227_s12 = scalar_lea.sflag [#allocation3], %s3616_s9  ;;  %s237_s17 = int_to_ptr.hbm [resolvable:$true] %s236_s17 }
  0x37   : > { %3142 = dma.hbm_to_vmem [thread:$0]  (!%p3140_p10), %s206_s8, 48, %s208_s2, [#allocation9]  }
  0x38   : > { %s3508_s4 = smov 768   ;;  %s3509_s6 = smov 256  }
  0x39   : > { %s3510_s18 = smov 16   ;;  %s3122_s29 = smul.u32 768, %s3497_s26 }
  0x3a   : > { %3146 = dma.hbm_to_vmem [thread:$0]  (!%p3618_p7), %s237_s17, 12288, %s3629_s15, %s227_s12, %s3508_s4, %s3509_s6, %s3510_s18  }
  0x3b   : > { %s4282_s28 = sshll.u32 %s3636_s13, 4  ;;  %s277_s24 = scalar_lea.hbm %s4245_s3, %s3122_s29  ;;  %s281_s28 = int_to_ptr.vmem [resolvable:$true] %s4282_s28 }
  0x3c   : > { %s278_s27 = sshll.u32 %s277_s24, 4  ;;  %s3511_s30 = smov 192   ;;  %s279_s27 = int_to_ptr.hbm [resolvable:$true] %s278_s27 }
  0x3d   : > { %s3512_s11 = smov 12   ;;  %292 = sbr.rel (%p3673_p6) target bundleno = 551 (0x227), region = 40 }
  0x3e   : > { %3152 = dma.hbm_to_vmem [thread:$0]  (!%p3618_p7), %s279_s27, 12288, %s281_s28, %s3631_s14, %s3511_s30, %s3511_s30, %s3512_s11  }
  0x3f   : > { %s294_s2 = sand.u32 (!%p3673_p6), 1, %s3481_s22  }
  0x40   : > { %s3123_s4 = smul.u32 (!%p3673_p6), 768, %s294_s2  ;;  %s295_s18 = scalar_lea.sflag (!%p3673_p6), [#allocation3], %s294_s2 }
  0x42   : > { %s3704_s20 = scalar_lea.vmem [#allocation2], %s3123_s4 }
  0x43   : > { %3448 = dma.done.wait (%p3651_p11), %s295_s18, 12288  }
  0x44   : > { %3450 = vsyncadd (%p3651_p11), %s295_s18, 4294955008  ;;  %s304_s5 = sand.u32 1, %s3640_s16   ;;  %s2150_s24 = sshll.u32 %s294_s2, 2 }
  0x45   : > { %s305_s28 = scalar_lea.sflag [#allocation6], %s304_s5  ;;  %s3711_s9 = scalar_lea.vmem [#allocation5], %s2150_s24 }
  0x46   : > { %3452 = dma.done.wait (%p3651_p11), %s305_s28, 12352  }
  0x47   : > { %3454 = vsyncadd (%p3651_p11), %s305_s28, 4294954944  ;;  %s3717_s10 = scalar_lea.vmem [#allocation7], %s3123_s4 }
  0x48   : > { %3456 = dma.done.wait (%p84_p9), [#allocation9], 48  }
  0x49   : > { %3458 = vsyncadd (%p84_p9), [#allocation9], 4294967248  ;;  %s363_s15 = sand.u32 1, %s3469_s19   ;;  %p366_p7 = scmp.lt.s32.totalorder %s3493_s25, 1  ;;  %v2267_v0 = vld [vmem:[%s3704_s20 + $0xe0] sm:$0xf] }
  0x4a   : > { %s3726_s14 = smul.u32 24, %s363_s15  ;;  %v2958_v1 = vld [vmem:[%s3704_s20 + $0xec] sm:$0xf0]  ;;  %v2395_v2 = vld [vmem:[%s3704_s20 + $0x1e0] sm:$0xf]  ;;  %s4283_s8 = sld [smem:[#allocation18_spill]] }
  0x4b   : > { %v2268_v3 = vor.u32 %v2958_v1, %v2267_v0  ;;  %v2990_v4 = vld [vmem:[%s3704_s20 + $0x1ec] sm:$0xf0]  ;;  %v2523_v5 = vld [vmem:[%s3704_s20 + $0x2e0] sm:$0xf]  ;;  %v2956_v9 = vld [vmem:[%s3704_s20 + $0xe4] sm:$0xf] }
  0x4c   : > { %v3022_v6 = vld [vmem:[%s3704_s20 + $0x2ec] sm:$0xf0]  ;;  %v2396_v7 = vor.u32 %v2990_v4, %v2395_v2  ;;  %v2269_v10 = vld [vmem:[%s3704_s20 + $0xf0] sm:$0xf0]  ;;  %v2251_v11 = vld [vmem:[%s3704_s20 + $0xc0] sm:$0xf] }
  0x4d   : > { %v2524_v8 = vor.u32 %v3022_v6, %v2523_v5  ;;  %973 = vmatpush.bf16.msra.mxu0 %v2268_v3  ;;  %v2272_v12 = vor.u32 %v2956_v9, %v2269_v10  ;;  %v2954_v13 = vld [vmem:[%s3704_s20 + $0xcc] sm:$0xf0]  ;;  %v2379_v14 = vld [vmem:[%s3704_s20 + $0x1c0] sm:$0xf]  ;;  %v2952_v20 = vld [vmem:[%s3704_s20 + $0xc4] sm:$0xf] }
  0x4e   : > { %v2986_v15 = vld [vmem:[%s3704_s20 + $0x1cc] sm:$0xf0]  ;;  %986 = vmatpush.bf16.msra.mxu1 %v2396_v7  ;;  %v2252_v16 = vor.u32 %v2954_v13, %v2251_v11  ;;  %v2507_v18 = vld [vmem:[%s3704_s20 + $0x2c0] sm:$0xf]  ;;  %v2253_v22 = vld [vmem:[%s3704_s20 + $0xd0] sm:$0xf0] }
  0x4f   : > { %999 = vmatpush.bf16.msra.mxu2 %v2524_v8  ;;  %v2380_v17 = vor.u32 %v2986_v15, %v2379_v14  ;;  %v3018_v19 = vld [vmem:[%s3704_s20 + $0x2cc] sm:$0xf0]  ;;  %1012 = vmatpush.bf16.msra.mxu3 %v2272_v12  ;;  %v2235_v23 = vld [vmem:[%s3704_s20 + $0xa0] sm:$0xf]  ;;  %v2256_v25 = vor.u32 %v2952_v20, %v2253_v22  ;;  %v2948_v31 = vld [vmem:[%s3704_s20 + $0xa4] sm:$0xf] }
  0x50   : > { %v2508_v21 = vor.u32 %v3018_v19, %v2507_v18  ;;  %v2950_v24 = vld [vmem:[%s3704_s20 + $0xac] sm:$0xf0]  ;;  %v2363_v26 = vld [vmem:[%s3704_s20 + $0x1a0] sm:$0xf]  ;;  %v2237_v32 = vld [vmem:[%s3704_s20 + $0xb0] sm:$0xf0] }
  0x51   : > { %v2982_v27 = vld [vmem:[%s3704_s20 + $0x1ac] sm:$0xf0]  ;;  %v2491_v28 = vld [vmem:[%s3704_s20 + $0x2a0] sm:$0xf]  ;;  %974 = vmatpush.bf16.msra.mxu0 %v2252_v16  ;;  %v2236_v29 = vor.u32 %v2950_v24, %v2235_v23  ;;  %v2240_v38 = vor.u32 %v2948_v31, %v2237_v32  ;;  %v2944_v42 = vld [vmem:[%s3704_s20 + $0x84] sm:$0xf] }
  0x52   : > { %v3014_v30 = vld [vmem:[%s3704_s20 + $0x2ac] sm:$0xf0]  ;;  %987 = vmatpush.bf16.msra.mxu1 %v2380_v17  ;;  %v2364_v33 = vor.u32 %v2982_v27, %v2363_v26  ;;  %v2219_v35 = vld [vmem:[%s3704_s20 + $0x80] sm:$0xf]  ;;  %v2221_v43 = vld [vmem:[%s3704_s20 + $0x90] sm:$0xf0] }
  0x53   : > { %1000 = vmatpush.bf16.msra.mxu2 %v2508_v21  ;;  %v2492_v34 = vor.u32 %v3014_v30, %v2491_v28  ;;  %v2946_v36 = vld [vmem:[%s3704_s20 + $0x8c] sm:$0xf0]  ;;  %v2347_v37 = vld [vmem:[%s3704_s20 + $0x180] sm:$0xf]  ;;  %1013 = vmatpush.bf16.msra.mxu3 %v2256_v25  ;;  %s3764_s13 = scalar_select %p366_p7, %s3493_s25, 1  ;;  %v2224_v50 = vor.u32 %v2944_v42, %v2221_v43 }
  0x54   : > { %v2978_v39 = vld [vmem:[%s3704_s20 + $0x18c] sm:$0xf0]  ;;  %v2475_v40 = vld [vmem:[%s3704_s20 + $0x280] sm:$0xf]  ;;  %v2220_v44 = vor.u32 %v2946_v36, %v2219_v35  ;;  %v2940_v54 = vld [vmem:[%s3704_s20 + $0x64] sm:$0xf] }
  0x55   : > { %v3010_v41 = vld [vmem:[%s3704_s20 + $0x28c] sm:$0xf0]  ;;  %975 = vmatpush.bf16.msra.mxu0 %v2236_v29  ;;  %v2348_v45 = vor.u32 %v2978_v39, %v2347_v37  ;;  %v2203_v47 = vld [vmem:[%s3704_s20 + $0x60] sm:$0xf]  ;;  %v2205_v55 = vld [vmem:[%s3704_s20 + $0x70] sm:$0xf0] }
  0x56   : > { %988 = vmatpush.bf16.msra.mxu1 %v2364_v33  ;;  %v2476_v46 = vor.u32 %v3010_v41, %v2475_v40  ;;  %v2942_v48 = vld [vmem:[%s3704_s20 + $0x6c] sm:$0xf0]  ;;  %v2331_v49 = vld [vmem:[%s3704_s20 + $0x160] sm:$0xf]  ;;  %s3125_s16 = smul.u32 12, %s3764_s13  ;;  %v2208_v62 = vor.u32 %v2940_v54, %v2205_v55  ;;  %s4168_s7 = scalar_lea.vmem [#allocation10], %s3726_s14 }
  0x57   : > { %1001 = vmatpush.bf16.msra.mxu2 %v2492_v34  ;;  %1014 = vmatpush.bf16.msra.mxu3 %v2240_v38  ;;  %v2974_v51 = vld [vmem:[%s3704_s20 + $0x16c] sm:$0xf0]  ;;  %v2459_v52 = vld [vmem:[%s3704_s20 + $0x260] sm:$0xf]  ;;  %v2204_v56 = vor.u32 %v2942_v48, %v2203_v47  ;;  %v2936_v2 = vld [vmem:[%s3704_s20 + $0x44] sm:$0xf] }
  0x58   : > { %v3006_v53 = vld [vmem:[%s3704_s20 + $0x26c] sm:$0xf0]  ;;  %v2332_v57 = vor.u32 %v2974_v51, %v2331_v49  ;;  %v2187_v59 = vld [vmem:[%s3704_s20 + $0x40] sm:$0xf]  ;;  %v2189_v3 = vld [vmem:[%s3704_s20 + $0x50] sm:$0xf0]  ;;  %s370_s6 = scalar_lea.vmem %s4242_s0, %s3125_s16 }
  0x59   : > { %976 = vmatpush.bf16.msra.mxu0 %v2220_v44  ;;  %v2460_v58 = vor.u32 %v3006_v53, %v2459_v52  ;;  %v2938_v60 = vld [vmem:[%s3704_s20 + $0x4c] sm:$0xf0]  ;;  %v2315_v61 = vld [vmem:[%s3704_s20 + $0x140] sm:$0xf]  ;;  %v2192_v10 = vor.u32 %v2936_v2, %v2189_v3  ;;  %v2932_v14 = vld [vmem:[%s3704_s20 + $0x24] sm:$0xf] }
  0x5a   : > { %989 = vmatpush.bf16.msra.mxu1 %v2348_v45  ;;  %v2970_v63 = vld [vmem:[%s3704_s20 + $0x14c] sm:$0xf0]  ;;  %v2443_v0 = vld [vmem:[%s3704_s20 + $0x240] sm:$0xf]  ;;  %v2188_v4 = vor.u32 %v2938_v60, %v2187_v59  ;;  %v2173_v15 = vld [vmem:[%s3704_s20 + $0x30] sm:$0xf0] }
  0x5b   : > { %1002 = vmatpush.bf16.msra.mxu2 %v2476_v46  ;;  %1015 = vmatpush.bf16.msra.mxu3 %v2224_v50  ;;  %v3002_v1 = vld [vmem:[%s3704_s20 + $0x24c] sm:$0xf0]  ;;  %v2316_v5 = vor.u32 %v2970_v63, %v2315_v61  ;;  %v2171_v7 = vld [vmem:[%s3704_s20 + $0x20] sm:$0xf]  ;;  %v375_v25 = vld [vmem:[%s370_s6 + $0x8] sm:$0xf]  ;;  %v2176_v26 = vor.u32 %v2932_v14, %v2173_v15 }
  0x5c   : > { %v2444_v6 = vor.u32 %v3002_v1, %v2443_v0  ;;  %v2934_v8 = vld [vmem:[%s3704_s20 + $0x2c] sm:$0xf0]  ;;  %v2299_v9 = vld [vmem:[%s3704_s20 + $0x120] sm:$0xf]  ;;  %v2928_v27 = vld [vmem:[%s3704_s20 + $0x4] sm:$0xf]  ;;  %v486_v37 = vunpack.c.l.b16 %v375_v25 }
  0x5d   : > { %977 = vmatpush.bf16.msra.mxu0 %v2204_v56  ;;  %v2966_v11 = vld [vmem:[%s3704_s20 + $0x12c] sm:$0xf0]  ;;  %v2427_v12 = vld [vmem:[%s3704_s20 + $0x220] sm:$0xf]  ;;  %v2172_v17 = vor.u32 %v2934_v8, %v2171_v7  ;;  %v2157_v28 = vld [vmem:[%s3704_s20 + $0x10] sm:$0xf0] }
  0x5e   : > { %990 = vmatpush.bf16.msra.mxu1 %v2332_v57  ;;  %v2998_v13 = vld [vmem:[%s3704_s20 + $0x22c] sm:$0xf0]  ;;  %v2155_v16 = vld [vmem:[%s3704_s20] sm:$0xf]  ;;  %v2300_v21 = vor.u32 %v2966_v11, %v2299_v9  ;;  %v2988_v30 = vld [vmem:[%s3704_s20 + $0x1e4] sm:$0xf]  ;;  %v2160_v44 = vor.u32 %v2928_v27, %v2157_v28  ;;  %v3815_v52 = vpack.c.b16 %v486_v37, %v486_v37 }
  0x5f   : > { %1003 = vmatpush.bf16.msra.mxu2 %v2460_v58  ;;  %1016 = vmatpush.bf16.msra.mxu3 %v2208_v62  ;;  %v2930_v18 = vld [vmem:[%s3704_s20 + $0xc] sm:$0xf0]  ;;  %v2283_v19 = vld [vmem:[%s3704_s20 + $0x100] sm:$0xf]  ;;  %v2428_v22 = vor.u32 %v2998_v13, %v2427_v12  ;;  %v2397_v31 = vld [vmem:[%s3704_s20 + $0x1f0] sm:$0xf0] }
  0x60   : > { %v2962_v20 = vld [vmem:[%s3704_s20 + $0x10c] sm:$0xf0]  ;;  %v2411_v23 = vld [vmem:[%s3704_s20 + $0x200] sm:$0xf]  ;;  %v3020_v32 = vld [vmem:[%s3704_s20 + $0x2e4] sm:$0xf]  ;;  %v2156_v33 = vor.u32 %v2930_v18, %v2155_v16  ;;  %v2400_v45 = vor.u32 %v2988_v30, %v2397_v31 }
  0x61   : > { %978 = vmatpush.bf16.msra.mxu0 %v2188_v4  ;;  %v2994_v24 = vld [vmem:[%s3704_s20 + $0x20c] sm:$0xf0]  ;;  %v374_v29 = vld [vmem:[%s370_s6] sm:$0xff]  ;;  %v2525_v34 = vld [vmem:[%s3704_s20 + $0x2f0] sm:$0xf0]  ;;  %v2284_v38 = vor.u32 %v2962_v20, %v2283_v19  ;;  %p2921_p9 = scmp.ne.s32.totalorder %s4283_s8, 0 }
  0x62   : > { %991 = vmatpush.bf16.msra.mxu1 %v2316_v5  ;;  %v2275_v35 = vld [vmem:[%s3704_s20 + $0xe8] sm:$0xf]  ;;  %v2959_v36 = vld [vmem:[%s3704_s20 + $0xf4] sm:$0xf0]  ;;  %v2412_v39 = vor.u32 %v2994_v24, %v2411_v23  ;;  %v484_v42 = vunpack.c.l.b16 %v374_v29  ;;  %v485_v43 = vunpack.c.h.b16 %v374_v29  ;;  %v2528_v46 = vor.u32 %v3020_v32, %v2525_v34  ;;  %v2984_v48 = vld [vmem:[%s3704_s20 + $0x1c4] sm:$0xf] }
  0x63   : > { %1004 = vmatpush.bf16.msra.mxu2 %v2444_v6  ;;  %1017 = vmatpush.bf16.msra.mxu3 %v2192_v10  ;;  %v2403_v40 = vld [vmem:[%s3704_s20 + $0x1e8] sm:$0xf]  ;;  %v2991_v41 = vld [vmem:[%s3704_s20 + $0x1f4] sm:$0xf0]  ;;  %v2276_v47 = vor.u32 %v2959_v36, %v2275_v35  ;;  %v2381_v49 = vld [vmem:[%s3704_s20 + $0x1d0] sm:$0xf0] }
  0x64   : > { %v3016_v50 = vld [vmem:[%s3704_s20 + $0x2c4] sm:$0xf]  ;;  %v2404_v51 = vor.u32 %v2991_v41, %v2403_v40  ;;  %v2509_v53 = vld [vmem:[%s3704_s20 + $0x2d0] sm:$0xf0]  ;;  %v2259_v54 = vld [vmem:[%s3704_s20 + $0xc8] sm:$0xf]  ;;  %v3820_v56 = vpack.c.b16 %v484_v42, %v484_v42  ;;  %v3824_v59 = vpack.c.b16 %v485_v43, %v485_v43  ;;  %v2384_v60 = vor.u32 %v2984_v48, %v2381_v49 }
  0x65   : > { %979 = vmatpush.bf16.msra.mxu0 %v2172_v17  ;;  %v2955_v55 = vld [vmem:[%s3704_s20 + $0xd4] sm:$0xf0]  ;;  %v2387_v57 = vld [vmem:[%s3704_s20 + $0x1c8] sm:$0xf]  ;;  %v2512_v61 = vor.u32 %v3016_v50, %v2509_v53  ;;  %v2980_v63 = vld [vmem:[%s3704_s20 + $0x1a4] sm:$0xf] }
  0x66   : > { %992 = vmatpush.bf16.msra.mxu1 %v2300_v21  ;;  %v2987_v58 = vld [vmem:[%s3704_s20 + $0x1d4] sm:$0xf0]  ;;  %v2260_v62 = vor.u32 %v2955_v55, %v2259_v54  ;;  %v2365_v0 = vld [vmem:[%s3704_s20 + $0x1b0] sm:$0xf0]  ;;  %v3012_v1 = vld [vmem:[%s3704_s20 + $0x2a4] sm:$0xf] }
  0x67   : > { %1005 = vmatpush.bf16.msra.mxu2 %v2428_v22  ;;  %1018 = vmatpush.bf16.msra.mxu3 %v2176_v26  ;;  %v2388_v2 = vor.u32 %v2987_v58, %v2387_v57  ;;  %v2493_v3 = vld [vmem:[%s3704_s20 + $0x2b0] sm:$0xf0]  ;;  %v2243_v4 = vld [vmem:[%s3704_s20 + $0xa8] sm:$0xf]  ;;  %v2951_v5 = vld [vmem:[%s3704_s20 + $0xb4] sm:$0xf0]  ;;  %v2368_v8 = vor.u32 %v2980_v63, %v2365_v0 }
  0x68   : > { %v2371_v6 = vld [vmem:[%s3704_s20 + $0x1a8] sm:$0xf]  ;;  %v2983_v7 = vld [vmem:[%s3704_s20 + $0x1b4] sm:$0xf0]  ;;  %v2496_v9 = vor.u32 %v3012_v1, %v2493_v3  ;;  %v2244_v10 = vor.u32 %v2951_v5, %v2243_v4  ;;  %v2976_v11 = vld [vmem:[%s3704_s20 + $0x184] sm:$0xf] }
  0x69   : > { %980 = vmatpush.bf16.msra.mxu0 %v2156_v33  ;;  %v2349_v12 = vld [vmem:[%s3704_s20 + $0x190] sm:$0xf0]  ;;  %v3008_v13 = vld [vmem:[%s3704_s20 + $0x284] sm:$0xf]  ;;  %v2372_v14 = vor.u32 %v2983_v7, %v2371_v6  ;;  %v2227_v16 = vld [vmem:[%s3704_s20 + $0x88] sm:$0xf] }
  0x6a   : > { %993 = vmatpush.bf16.msra.mxu1 %v2284_v38  ;;  %v2477_v15 = vld [vmem:[%s3704_s20 + $0x290] sm:$0xf0]  ;;  %v2947_v17 = vld [vmem:[%s3704_s20 + $0x94] sm:$0xf0]  ;;  %v2355_v18 = vld [vmem:[%s3704_s20 + $0x188] sm:$0xf]  ;;  %v2352_v20 = vor.u32 %v2976_v11, %v2349_v12 }
  0x6b   : > { %1006 = vmatpush.bf16.msra.mxu2 %v2412_v39  ;;  %1019 = vmatpush.bf16.msra.mxu3 %v2160_v44  ;;  %v2979_v19 = vld [vmem:[%s3704_s20 + $0x194] sm:$0xf0]  ;;  %v2480_v21 = vor.u32 %v3008_v13, %v2477_v15  ;;  %v2228_v22 = vor.u32 %v2947_v17, %v2227_v16  ;;  %v2972_v23 = vld [vmem:[%s3704_s20 + $0x164] sm:$0xf]  ;;  %v2333_v24 = vld [vmem:[%s3704_s20 + $0x170] sm:$0xf0] }
  0x6c   : > { %981 = vmatmul.bf16.vlgmr.msra.gmra.mxu0 %v3820_v56  ;;  %v3004_v25 = vld [vmem:[%s3704_s20 + $0x264] sm:$0xf]  ;;  %v2356_v26 = vor.u32 %v2979_v19, %v2355_v18  ;;  %v2461_v27 = vld [vmem:[%s3704_s20 + $0x270] sm:$0xf0]  ;;  %v2211_v28 = vld [vmem:[%s3704_s20 + $0x68] sm:$0xf]  ;;  %v2336_v32 = vor.u32 %v2972_v23, %v2333_v24 }
  0x6d   : > { %1025 = vmatpush.bf16.msrb.mxu0 %v2400_v45  ;;  %994 = vmatmul.bf16.vlgmr.msra.gmra.mxu1 %v3824_v59  ;;  %v2943_v29 = vld [vmem:[%s3704_s20 + $0x74] sm:$0xf0]  ;;  %v2339_v30 = vld [vmem:[%s3704_s20 + $0x168] sm:$0xf]  ;;  %v2464_v33 = vor.u32 %v3004_v25, %v2461_v27  ;;  %v2968_v35 = vld [vmem:[%s3704_s20 + $0x144] sm:$0xf] }
  0x6e   : > { %1038 = vmatpush.bf16.msrb.mxu1 %v2528_v46  ;;  %1007 = vmatmul.bf16.vlgmr.msra.gmra.mxu2 %v3815_v52  ;;  %v2975_v31 = vld [vmem:[%s3704_s20 + $0x174] sm:$0xf0]  ;;  %v2212_v34 = vor.u32 %v2943_v29, %v2211_v28  ;;  %v2317_v36 = vld [vmem:[%s3704_s20 + $0x150] sm:$0xf0]  ;;  %v3000_v37 = vld [vmem:[%s3704_s20 + $0x244] sm:$0xf] }
  0x6f   : > { %1051 = vmatpush.bf16.msrb.mxu2 %v2276_v47  ;;  %1064 = vmatpush.bf16.msrb.mxu3 %v2404_v51  ;;  %v2340_v38 = vor.u32 %v2975_v31, %v2339_v30  ;;  %v2445_v39 = vld [vmem:[%s3704_s20 + $0x250] sm:$0xf0]  ;;  %v2195_v40 = vld [vmem:[%s3704_s20 + $0x48] sm:$0xf]  ;;  %v2939_v41 = vld [vmem:[%s3704_s20 + $0x54] sm:$0xf0]  ;;  %v2320_v44 = vor.u32 %v2968_v35, %v2317_v36 }
  0x70   : > { %1020 = vmatmul.bf16.vlgmr.msra.gmra.mxu3 %v3820_v56  ;;  %v2323_v42 = vld [vmem:[%s3704_s20 + $0x148] sm:$0xf]  ;;  %v2971_v43 = vld [vmem:[%s3704_s20 + $0x154] sm:$0xf0]  ;;  %v2448_v45 = vor.u32 %v3000_v37, %v2445_v39  ;;  %v2196_v46 = vor.u32 %v2939_v41, %v2195_v40  ;;  %v2964_v47 = vld [vmem:[%s3704_s20 + $0x124] sm:$0xf] }
  0x71   : > { %1026 = vmatpush.bf16.msrb.mxu0 %v2384_v60  ;;  %v2301_v48 = vld [vmem:[%s3704_s20 + $0x130] sm:$0xf0]  ;;  %v2996_v49 = vld [vmem:[%s3704_s20 + $0x224] sm:$0xf]  ;;  %v2324_v50 = vor.u32 %v2971_v43, %v2323_v42  ;;  %v2179_v53 = vld [vmem:[%s3704_s20 + $0x28] sm:$0xf] }
  0x72   : > { %1039 = vmatpush.bf16.msrb.mxu1 %v2512_v61  ;;  %v2429_v51 = vld [vmem:[%s3704_s20 + $0x230] sm:$0xf0]  ;;  %v2935_v54 = vld [vmem:[%s3704_s20 + $0x34] sm:$0xf0]  ;;  %v2307_v55 = vld [vmem:[%s3704_s20 + $0x128] sm:$0xf]  ;;  %v2304_v58 = vor.u32 %v2964_v47, %v2301_v48 }
  0x73   : > { %1052 = vmatpush.bf16.msrb.mxu2 %v2260_v62  ;;  %1065 = vmatpush.bf16.msrb.mxu3 %v2388_v2  ;;  %v2967_v57 = vld [vmem:[%s3704_s20 + $0x134] sm:$0xf0]  ;;  %v2960_v60 = vld [vmem:[%s3704_s20 + $0x104] sm:$0xf]  ;;  %v2285_v61 = vld [vmem:[%s3704_s20 + $0x110] sm:$0xf0]  ;;  %v2432_v62 = vor.u32 %v2996_v49, %v2429_v51  ;;  %v2180_v63 = vor.u32 %v2935_v54, %v2179_v53 }
  0x74   : > { %v2992_v0 = vld [vmem:[%s3704_s20 + $0x204] sm:$0xf]  ;;  %v2413_v1 = vld [vmem:[%s3704_s20 + $0x210] sm:$0xf0]  ;;  %v2163_v2 = vld [vmem:[%s3704_s20 + $0x8] sm:$0xf]  ;;  %v2308_v3 = vor.u32 %v2967_v57, %v2307_v55 }
  0x75   : > { %1027 = vmatpush.bf16.msrb.mxu0 %v2368_v8  ;;  %v2931_v4 = vld [vmem:[%s3704_s20 + $0x14] sm:$0xf0]  ;;  %v2291_v5 = vld [vmem:[%s3704_s20 + $0x108] sm:$0xf]  ;;  %v2277_v11 = vld [vmem:[%s3704_s20 + $0xf8] sm:$0xf0] }
  0x76   : > { %1040 = vmatpush.bf16.msrb.mxu1 %v2496_v9  ;;  %v2963_v6 = vld [vmem:[%s3704_s20 + $0x114] sm:$0xf0]  ;;  %v2531_v7 = vld [vmem:[%s3704_s20 + $0x2e8] sm:$0xf]  ;;  %v2957_v9 = vld [vmem:[%s3704_s20 + $0xec] sm:$0xf]  ;;  %v2164_v15 = vor.u32 %v2931_v4, %v2163_v2 }
  0x77   : > { %1053 = vmatpush.bf16.msrb.mxu2 %v2244_v10  ;;  %1066 = vmatpush.bf16.msrb.mxu3 %v2372_v14  ;;  %v3023_v8 = vld [vmem:[%s3704_s20 + $0x2f4] sm:$0xf0]  ;;  %v2288_v10 = vor.u32 %v2960_v60, %v2285_v61  ;;  %v2989_v12 = vld [vmem:[%s3704_s20 + $0x1ec] sm:$0xf]  ;;  %v2405_v13 = vld [vmem:[%s3704_s20 + $0x1f8] sm:$0xf0]  ;;  %v2416_v14 = vor.u32 %v2992_v0, %v2413_v1  ;;  %v2292_v18 = vor.u32 %v2963_v6, %v2291_v5 }
  0x78   : > { %v3021_v16 = vld [vmem:[%s3704_s20 + $0x2ec] sm:$0xf]  ;;  %v2533_v17 = vld [vmem:[%s3704_s20 + $0x2f8] sm:$0xf0]  ;;  %v2532_v19 = vor.u32 %v3023_v8, %v2531_v7  ;;  %v3019_v23 = vld [vmem:[%s3704_s20 + $0x2d4] sm:$0xf0] }
  0x79   : > { %1028 = vmatpush.bf16.msrb.mxu0 %v2352_v20  ;;  %v2280_v20 = vor.u32 %v2957_v9, %v2277_v11  ;;  %v2953_v24 = vld [vmem:[%s3704_s20 + $0xcc] sm:$0xf]  ;;  %v2536_v25 = vor.u32 %v3021_v16, %v2533_v17  ;;  %v2389_v28 = vld [vmem:[%s3704_s20 + $0x1d8] sm:$0xf0]  ;;  %v3015_v35 = vld [vmem:[%s3704_s20 + $0x2b4] sm:$0xf0] }
  0x7a   : > { %1041 = vmatpush.bf16.msrb.mxu1 %v2480_v21  ;;  %v2408_v21 = vor.u32 %v2989_v12, %v2405_v13  ;;  %v2985_v27 = vld [vmem:[%s3704_s20 + $0x1cc] sm:$0xf]  ;;  %v2517_v30 = vld [vmem:[%s3704_s20 + $0x2d8] sm:$0xf0]  ;;  %v3011_v47 = vld [vmem:[%s3704_s20 + $0x294] sm:$0xf0] }
  0x7b   : > { %1054 = vmatpush.bf16.msrb.mxu2 %v2228_v22  ;;  %1067 = vmatpush.bf16.msrb.mxu3 %v2356_v26  ;;  %v2515_v22 = vld [vmem:[%s3704_s20 + $0x2c8] sm:$0xf]  ;;  %v2261_v26 = vld [vmem:[%s3704_s20 + $0xd8] sm:$0xf0]  ;;  %v3017_v29 = vld [vmem:[%s3704_s20 + $0x2cc] sm:$0xf] }
  0x7c   : > { %v2516_v31 = vor.u32 %v3019_v23, %v2515_v22  ;;  %v2949_v36 = vld [vmem:[%s3704_s20 + $0xac] sm:$0xf]  ;;  %v2520_v37 = vor.u32 %v3017_v29, %v2517_v30  ;;  %v2373_v40 = vld [vmem:[%s3704_s20 + $0x1b8] sm:$0xf0]  ;;  %v2467_v61 = vld [vmem:[%s3704_s20 + $0x268] sm:$0xf] }
  0x7d   : > { %1029 = vmatpush.bf16.msrb.mxu0 %v2336_v32  ;;  %v2264_v32 = vor.u32 %v2953_v24, %v2261_v26  ;;  %v2981_v39 = vld [vmem:[%s3704_s20 + $0x1ac] sm:$0xf]  ;;  %v2501_v42 = vld [vmem:[%s3704_s20 + $0x2b8] sm:$0xf0]  ;;  %v2451_v9 = vld [vmem:[%s3704_s20 + $0x248] sm:$0xf] }
  0x7e   : > { %1042 = vmatpush.bf16.msrb.mxu1 %v2464_v33  ;;  %v2392_v33 = vor.u32 %v2985_v27, %v2389_v28  ;;  %v3013_v41 = vld [vmem:[%s3704_s20 + $0x2ac] sm:$0xf]  ;;  %v2357_v53 = vld [vmem:[%s3704_s20 + $0x198] sm:$0xf0]  ;;  %v2999_v22 = vld [vmem:[%s3704_s20 + $0x234] sm:$0xf0] }
  0x7f   : > { %1055 = vmatpush.bf16.msrb.mxu2 %v2212_v34  ;;  %1068 = vmatpush.bf16.msrb.mxu3 %v2340_v38  ;;  %v2499_v34 = vld [vmem:[%s3704_s20 + $0x2a8] sm:$0xf]  ;;  %v2245_v38 = vld [vmem:[%s3704_s20 + $0xb8] sm:$0xf0]  ;;  %v2945_v48 = vld [vmem:[%s3704_s20 + $0x8c] sm:$0xf]  ;;  %v2504_v49 = vor.u32 %v3013_v41, %v2501_v42 }
  0x80   : > { %v2500_v43 = vor.u32 %v3015_v35, %v2499_v34  ;;  %v2977_v51 = vld [vmem:[%s3704_s20 + $0x18c] sm:$0xf]  ;;  %v2485_v55 = vld [vmem:[%s3704_s20 + $0x298] sm:$0xf0]  ;;  %v2995_v34 = vld [vmem:[%s3704_s20 + $0x214] sm:$0xf0] }
  0x81   : > { %1030 = vmatpush.bf16.msrb.mxu0 %v2320_v44  ;;  %v2248_v44 = vor.u32 %v2949_v36, %v2245_v38  ;;  %v3009_v54 = vld [vmem:[%s3704_s20 + $0x28c] sm:$0xf]  ;;  %v2360_v60 = vor.u32 %v2977_v51, %v2357_v53  ;;  %v2213_v1 = vld [vmem:[%s3704_s20 + $0x78] sm:$0xf0]  ;;  %v2623_v42 = vld [vmem:[%s3717_s10 + $0xa8] sm:$0xf] }
  0x82   : > { %1043 = vmatpush.bf16.msrb.mxu1 %v2448_v45  ;;  %v2376_v45 = vor.u32 %v2981_v39, %v2373_v40  ;;  %v2488_v0 = vor.u32 %v3009_v54, %v2485_v55  ;;  %v2973_v2 = vld [vmem:[%s3704_s20 + $0x16c] sm:$0xf]  ;;  %v2469_v5 = vld [vmem:[%s3704_s20 + $0x278] sm:$0xf0]  ;;  %v2611_v51 = vld [vmem:[%s3717_s10 + $0x90] sm:$0xf] }
  0x83   : > { %1056 = vmatpush.bf16.msrb.mxu2 %v2196_v46  ;;  %1069 = vmatpush.bf16.msrb.mxu3 %v2324_v50  ;;  %v2483_v46 = vld [vmem:[%s3704_s20 + $0x288] sm:$0xf]  ;;  %v2229_v50 = vld [vmem:[%s3704_s20 + $0x98] sm:$0xf0]  ;;  %v3005_v4 = vld [vmem:[%s3704_s20 + $0x26c] sm:$0xf] }
  0x84   : > { %v2484_v57 = vor.u32 %v3011_v47, %v2483_v46  ;;  %v2937_v11 = vld [vmem:[%s3704_s20 + $0x4c] sm:$0xf]  ;;  %v2472_v12 = vor.u32 %v3005_v4, %v2469_v5  ;;  %v2197_v13 = vld [vmem:[%s3704_s20 + $0x58] sm:$0xf0]  ;;  %v3043_v53 = vld [vmem:[%s3717_s10 + $0x98] sm:$0xf0] }
  0x85   : > { %1031 = vmatpush.bf16.msrb.mxu0 %v2304_v58  ;;  %v2232_v58 = vor.u32 %v2945_v48, %v2229_v50  ;;  %v3001_v16 = vld [vmem:[%s3704_s20 + $0x24c] sm:$0xf]  ;;  %v2453_v17 = vld [vmem:[%s3704_s20 + $0x258] sm:$0xf0]  ;;  %v2707_v55 = vld [vmem:[%s3717_s10 + $0x150] sm:$0xf] }
  0x86   : > { %1044 = vmatpush.bf16.msrb.mxu1 %v2432_v62  ;;  %v3007_v62 = vld [vmem:[%s3704_s20 + $0x274] sm:$0xf0]  ;;  %v2933_v23 = vld [vmem:[%s3704_s20 + $0x2c] sm:$0xf]  ;;  %v2456_v24 = vor.u32 %v3001_v16, %v2453_v17  ;;  %v2309_v27 = vld [vmem:[%s3704_s20 + $0x138] sm:$0xf0] }
  0x87   : > { %1057 = vmatpush.bf16.msrb.mxu2 %v2180_v63  ;;  %1070 = vmatpush.bf16.msrb.mxu3 %v2308_v3  ;;  %v2941_v63 = vld [vmem:[%s3704_s20 + $0x6c] sm:$0xf]  ;;  %v2341_v3 = vld [vmem:[%s3704_s20 + $0x178] sm:$0xf0]  ;;  %v2468_v6 = vor.u32 %v3007_v62, %v2467_v61  ;;  %v2683_v5 = vld [vmem:[%s3717_s10 + $0x120] sm:$0xf] }
  0x88   : > { %v2216_v7 = vor.u32 %v2941_v63, %v2213_v1  ;;  %v2344_v8 = vor.u32 %v2973_v2, %v2341_v3  ;;  %v2965_v26 = vld [vmem:[%s3704_s20 + $0x12c] sm:$0xf]  ;;  %v2437_v29 = vld [vmem:[%s3704_s20 + $0x238] sm:$0xf0]  ;;  %v2695_v63 = vld [vmem:[%s3717_s10 + $0x138] sm:$0xf] }
  0x89   : > { %1032 = vmatpush.bf16.msrb.mxu0 %v2288_v10  ;;  %v3003_v10 = vld [vmem:[%s3704_s20 + $0x254] sm:$0xf0]  ;;  %v2997_v28 = vld [vmem:[%s3704_s20 + $0x22c] sm:$0xf]  ;;  %v2165_v36 = vld [vmem:[%s3704_s20 + $0x18] sm:$0xf0] }
  0x8a   : > { %1045 = vmatpush.bf16.msrb.mxu1 %v2416_v14  ;;  %v2969_v14 = vld [vmem:[%s3704_s20 + $0x14c] sm:$0xf]  ;;  %v2293_v39 = vld [vmem:[%s3704_s20 + $0x118] sm:$0xf0]  ;;  %v2587_v2 = vld [vmem:[%s3717_s10 + $0x60] sm:$0xf] }
  0x8b   : > { %1058 = vmatpush.bf16.msrb.mxu2 %v2164_v15  ;;  %1071 = vmatpush.bf16.msrb.mxu3 %v2292_v18  ;;  %v2325_v15 = vld [vmem:[%s3704_s20 + $0x158] sm:$0xf0]  ;;  %v2452_v18 = vor.u32 %v3003_v10, %v2451_v9  ;;  %v2929_v35 = vld [vmem:[%s3704_s20 + $0xc] sm:$0xf]  ;;  %v3037_v3 = vld [vmem:[%s3717_s10 + $0x68] sm:$0xf0] }
  0x8c   : > { %1033 = vmatmul.bf16.vlgmr.msrb.gmra.mxu0 %v3824_v59  ;;  %v2961_v38 = vld [vmem:[%s3704_s20 + $0x10c] sm:$0xf]  ;;  %v2421_v41 = vld [vmem:[%s3704_s20 + $0x218] sm:$0xf0]  ;;  %v2168_v47 = vor.u32 %v2929_v35, %v2165_v36  ;;  %v2551_v17 = vld [vmem:[%s3717_s10 + $0x18] sm:$0xf] }
  0x8d   : > { %1077 = vmatpush.bf16.msra.mxu0 %v2532_v19  ;;  %1046 = vmatmul.bf16.vlgmr.msrb.gmra.mxu1 %v3815_v52  ;;  %v2200_v19 = vor.u32 %v2937_v11, %v2197_v13  ;;  %v2993_v40 = vld [vmem:[%s3704_s20 + $0x20c] sm:$0xf]  ;;  %v3070_v46 = vld [vmem:[%s3717_s10 + $0x170] sm:$0xf0]  ;;  %v2296_v48 = vor.u32 %v2961_v38, %v2293_v39  ;;  %v2563_v11 = vld [vmem:[%s3717_s10 + $0x30] sm:$0xf] }
  0x8e   : > { %1090 = vmatpush.bf16.msra.mxu1 %v2280_v20  ;;  %1059 = vmatmul.bf16.vlgmr.msrb.gmra.mxu2 %v3820_v56  ;;  %v2328_v20 = vor.u32 %v2969_v14, %v2325_v15  ;;  %v3040_v61 = vld [vmem:[%s3717_s10 + $0x80] sm:$0xf0]  ;;  %v3058_v9 = vld [vmem:[%s3717_s10 + $0x110] sm:$0xf0]  ;;  %v2659_v14 = vld [vmem:[%s3717_s10 + $0xf0] sm:$0xf] }
  0x8f   : > { %1103 = vmatpush.bf16.msra.mxu2 %v2408_v21  ;;  %1116 = vmatpush.bf16.msra.mxu3 %v2536_v25  ;;  %v2435_v21 = vld [vmem:[%s3704_s20 + $0x228] sm:$0xf]  ;;  %v2181_v25 = vld [vmem:[%s3704_s20 + $0x38] sm:$0xf0]  ;;  %v3055_v15 = vld [vmem:[%s3717_s10 + $0xf8] sm:$0xf0] }
  0x90   : > { %1072 = vmatmul.bf16.vlgmr.msrb.gmra.mxu3 %v3824_v59  ;;  %v2436_v30 = vor.u32 %v2999_v22, %v2435_v21  ;;  %v2539_v21 = vld [vmem:[%s3717_s10] sm:$0xf]  ;;  %v3025_v22 = vld [vmem:[%s3717_s10 + $0x8] sm:$0xf0]  ;;  %v2647_v38 = vld [vmem:[%s3717_s10 + $0xd8] sm:$0xf] }
  0x91   : > { %1078 = vmatpush.bf16.msra.mxu0 %v2516_v31  ;;  %v2419_v31 = vld [vmem:[%s3704_s20 + $0x208] sm:$0xf]  ;;  %v3033_v36 = vld [vmem:[%s3717_s10 + $0x4c] sm:$0xf]  ;;  %v3052_v39 = vld [vmem:[%s3717_s10 + $0xe0] sm:$0xf0] }
  0x92   : > { %1091 = vmatpush.bf16.msra.mxu1 %v2264_v32  ;;  %v2184_v32 = vor.u32 %v2933_v23, %v2181_v25  ;;  %v3045_v23 = vld [vmem:[%s3717_s10 + $0xac] sm:$0xf]  ;;  %v2540_v25 = vor.u32 %v3025_v22, %v2539_v21  ;;  %v3082_v21 = vld [vmem:[%s3717_s10 + $0x1d0] sm:$0xf0]  ;;  %v2887_v22 = vld [vmem:[%s3717_s10 + $0x2b8] sm:$0xf] }
  0x93   : > { %1104 = vmatpush.bf16.msra.mxu2 %v2392_v33  ;;  %1117 = vmatpush.bf16.msra.mxu3 %v2520_v37  ;;  %v2312_v33 = vor.u32 %v2965_v26, %v2309_v27  ;;  %v2440_v37 = vor.u32 %v2997_v28, %v2437_v29  ;;  %v3042_v27 = vld [vmem:[%s3717_s10 + $0x94] sm:$0xf]  ;;  %v2613_v28 = vld [vmem:[%s3717_s10 + $0x9c] sm:$0xf0] }
  0x94   : > { %v2616_v29 = vor.u32 %v3042_v27, %v2613_v28  ;;  %v2673_v27 = vld [vmem:[%s3717_s10 + $0x114] sm:$0xf0] }
  0x95   : > { %1079 = vmatpush.bf16.msra.mxu0 %v2500_v43  ;;  %v3046_v43 = vld [vmem:[%s3717_s10 + $0xb0] sm:$0xf0] }
  0x96   : > { %1092 = vmatpush.bf16.msra.mxu1 %v2248_v44  ;;  %v2420_v44 = vor.u32 %v2995_v34, %v2419_v31  ;;  %v2624_v50 = vor.u32 %v3046_v43, %v2623_v42  ;;  %v2601_v31 = vld [vmem:[%s3717_s10 + $0x84] sm:$0xf0]  ;;  %v2589_v34 = vld [vmem:[%s3717_s10 + $0x6c] sm:$0xf0]  ;;  %v3030_v42 = vld [vmem:[%s3717_s10 + $0x34] sm:$0xf] }
  0x97   : > { %1105 = vmatpush.bf16.msra.mxu2 %v2376_v45  ;;  %1118 = vmatpush.bf16.msra.mxu3 %v2504_v49  ;;  %v2719_v45 = vld [vmem:[%s3717_s10 + $0x168] sm:$0xf]  ;;  %v2424_v49 = vor.u32 %v2993_v40, %v2421_v41  ;;  %v2648_v40 = vor.u32 %v3052_v39, %v2647_v38  ;;  %v2565_v43 = vld [vmem:[%s3717_s10 + $0x3c] sm:$0xf0] }
  0x98   : > { %v2720_v54 = vor.u32 %v3070_v46, %v2719_v45  ;;  %v3094_v45 = vld [vmem:[%s3717_s10 + $0x230] sm:$0xf0]  ;;  %v2661_v38 = vld [vmem:[%s3717_s10 + $0xfc] sm:$0xf0] }
  0x99   : > { %1080 = vmatpush.bf16.msra.mxu0 %v2484_v57  ;;  %v3067_v57 = vld [vmem:[%s3717_s10 + $0x158] sm:$0xf0] }
  0x9a   : > { %1093 = vmatpush.bf16.msra.mxu1 %v2232_v58  ;;  %v2612_v58 = vor.u32 %v3043_v53, %v2611_v51  ;;  %v2708_v62 = vor.u32 %v3067_v57, %v2707_v55  ;;  %v3027_v51 = vld [vmem:[%s3717_s10 + $0x1c] sm:$0xf]  ;;  %v3069_v53 = vld [vmem:[%s3717_s10 + $0x16c] sm:$0xf]  ;;  %v2553_v55 = vld [vmem:[%s3717_s10 + $0x24] sm:$0xf0] }
  0x9b   : > { %1106 = vmatpush.bf16.msra.mxu2 %v2360_v60  ;;  %1119 = vmatpush.bf16.msra.mxu3 %v2488_v0  ;;  %v2599_v60 = vld [vmem:[%s3717_s10 + $0x78] sm:$0xf]  ;;  %v3064_v0 = vld [vmem:[%s3717_s10 + $0x140] sm:$0xf0] }
  0x9c   : > { %v2600_v1 = vor.u32 %v3040_v61, %v2599_v60  ;;  %v2696_v4 = vor.u32 %v3064_v0, %v2695_v63  ;;  %v3091_v60 = vld [vmem:[%s3717_s10 + $0x218] sm:$0xf0]  ;;  %v2556_v63 = vor.u32 %v3027_v51, %v2553_v55  ;;  %v3024_v0 = vld [vmem:[%s3717_s10 + $0x4] sm:$0xf]  ;;  %v3073_v55 = vld [vmem:[%s3717_s10 + $0x188] sm:$0xf0] }
  0x9d   : > { %1081 = vmatpush.bf16.msra.mxu0 %v2468_v6  ;;  %v2575_v6 = vld [vmem:[%s3717_s10 + $0x48] sm:$0xf] }
  0x9e   : > { %1094 = vmatpush.bf16.msra.mxu1 %v2216_v7  ;;  %v3034_v7 = vld [vmem:[%s3717_s10 + $0x50] sm:$0xf0] }
  0x9f   : > { %1107 = vmatpush.bf16.msra.mxu2 %v2344_v8  ;;  %1120 = vmatpush.bf16.msra.mxu3 %v2472_v12  ;;  %v2671_v8 = vld [vmem:[%s3717_s10 + $0x108] sm:$0xf]  ;;  %v2576_v10 = vor.u32 %v3034_v7, %v2575_v6  ;;  %v3031_v12 = vld [vmem:[%s3717_s10 + $0x38] sm:$0xf0]  ;;  %v3118_v6 = vld [vmem:[%s3717_s10 + $0x2f0] sm:$0xf0] }
  0xa0   : > { %v2672_v13 = vor.u32 %v3058_v9, %v2671_v8  ;;  %v2564_v16 = vor.u32 %v3031_v12, %v2563_v11  ;;  %v3063_v7 = vld [vmem:[%s3717_s10 + $0x13c] sm:$0xf]  ;;  %v2779_v11 = vld [vmem:[%s3717_s10 + $0x1e0] sm:$0xf]  ;;  %v3085_v12 = vld [vmem:[%s3717_s10 + $0x1e8] sm:$0xf0] }
  0xa1   : > { %1082 = vmatpush.bf16.msra.mxu0 %v2452_v18  ;;  %v3028_v18 = vld [vmem:[%s3717_s10 + $0x20] sm:$0xf0] }
  0xa2   : > { %1095 = vmatpush.bf16.msra.mxu1 %v2200_v19  ;;  %v2660_v19 = vor.u32 %v3055_v15, %v2659_v14  ;;  %v2780_v14 = vor.u32 %v3085_v12, %v2779_v11  ;;  %v3115_v15 = vld [vmem:[%s3717_s10 + $0x2d8] sm:$0xf0]  ;;  %v3090_v12 = vld [vmem:[%s3717_s10 + $0x214] sm:$0xf] }
  0xa3   : > { %1108 = vmatpush.bf16.msra.mxu2 %v2328_v20  ;;  %1121 = vmatpush.bf16.msra.mxu3 %v2456_v24  ;;  %v2552_v20 = vor.u32 %v3028_v18, %v2551_v17  ;;  %v2625_v24 = vld [vmem:[%s3717_s10 + $0xb4] sm:$0xf0]  ;;  %v2685_v17 = vld [vmem:[%s3717_s10 + $0x12c] sm:$0xf0] }
  0xa4   : > { %v2628_v26 = vor.u32 %v3045_v23, %v2625_v24  ;;  %v3112_v24 = vld [vmem:[%s3717_s10 + $0x2c0] sm:$0xf0] }
  0xa5   : > { %1083 = vmatpush.bf16.msra.mxu0 %v2436_v30  ;;  %v3039_v30 = vld [vmem:[%s3717_s10 + $0x7c] sm:$0xf] }
  0xa6   : > { %1096 = vmatpush.bf16.msra.mxu1 %v2184_v32  ;;  %v2604_v32 = vor.u32 %v3039_v30, %v2601_v31  ;;  %v3079_v30 = vld [vmem:[%s3717_s10 + $0x1b8] sm:$0xf0]  ;;  %v2875_v31 = vld [vmem:[%s3717_s10 + $0x2a0] sm:$0xf] }
  0xa7   : > { %1109 = vmatpush.bf16.msra.mxu2 %v2312_v33  ;;  %1122 = vmatpush.bf16.msra.mxu3 %v2440_v37  ;;  %v3036_v33 = vld [vmem:[%s3717_s10 + $0x64] sm:$0xf]  ;;  %v2577_v37 = vld [vmem:[%s3717_s10 + $0x54] sm:$0xf0] }
  0xa8   : > { %v2592_v35 = vor.u32 %v3036_v33, %v2589_v34  ;;  %v2580_v41 = vor.u32 %v3033_v36, %v2577_v37  ;;  %v3109_v34 = vld [vmem:[%s3717_s10 + $0x2a8] sm:$0xf0]  ;;  %v3054_v37 = vld [vmem:[%s3717_s10 + $0xf4] sm:$0xf] }
  0xa9   : > { %1084 = vmatpush.bf16.msra.mxu0 %v2420_v44  ;;  %v2815_v44 = vld [vmem:[%s3717_s10 + $0x228] sm:$0xf]  ;;  %v2664_v39 = vor.u32 %v3054_v37, %v2661_v38  ;;  %v2901_v38 = vld [vmem:[%s3717_s10 + $0x2dc] sm:$0xf0] }
  0xaa   : > { %1097 = vmatpush.bf16.msra.mxu1 %v2168_v47  ;;  %v2816_v46 = vor.u32 %v3094_v45, %v2815_v44  ;;  %v2635_v47 = vld [vmem:[%s3717_s10 + $0xc0] sm:$0xf] }
  0xab   : > { %1110 = vmatpush.bf16.msra.mxu2 %v2296_v48  ;;  %1123 = vmatpush.bf16.msra.mxu3 %v2424_v49  ;;  %v3049_v48 = vld [vmem:[%s3717_s10 + $0xc8] sm:$0xf0]  ;;  %v2568_v49 = vor.u32 %v3030_v42, %v2565_v43  ;;  %v2863_v42 = vld [vmem:[%s3717_s10 + $0x288] sm:$0xf] }
  0xac   : > { %1085 = vmatmul.bf16.vlgmr.msra.gmra.mxu0 %v3815_v52 }
  0xad   : > { %1777 = vmatpush.bf16.msrb.mxu0 %v2624_v50  ;;  %1098 = vmatmul.bf16.vlgmr.msra.gmra.mxu1 %v3820_v56  ;;  %v3061_v56 = vld [vmem:[%s3717_s10 + $0x128] sm:$0xf0]  ;;  %v2636_v50 = vor.u32 %v3049_v48, %v2635_v47 }
  0xae   : > { %1790 = vmatpush.bf16.msrb.mxu1 %v2720_v54  ;;  %1111 = vmatmul.bf16.vlgmr.msra.gmra.mxu2 %v3824_v59  ;;  %v2588_v59 = vor.u32 %v3037_v3, %v2587_v2  ;;  %v2721_v54 = vld [vmem:[%s3717_s10 + $0x174] sm:$0xf0]  ;;  %v2709_v2 = vld [vmem:[%s3717_s10 + $0x15c] sm:$0xf0] }
  0xaf   : > { %1124 = vmatmul.bf16.vlgmr.msra.gmra.mxu3 %v3815_v52  ;;  %v2684_v52 = vor.u32 %v3061_v56, %v2683_v5  ;;  %1803 = vmatpush.bf16.msrb.mxu2 %v2816_v46  ;;  %v2724_v57 = vor.u32 %v3069_v53, %v2721_v54  ;;  %v3088_v5 = vld [vmem:[%s3717_s10 + $0x200] sm:$0xf0]  ;;  %v2911_v56 = vld [vmem:[%s3717_s10 + $0x2e8] sm:$0xf]  ;;  %v3106_v46 = vld [vmem:[%s3717_s10 + $0x290] sm:$0xf0] }
  0xb0   : > { %v2912_v8 = vor.u32 %v3118_v6, %v2911_v56  ;;  %v2864_v48 = vor.u32 %v3106_v46, %v2863_v42  ;;  %v2731_v54 = vld [vmem:[%s3717_s10 + $0x180] sm:$0xf]  ;;  %v3047_v56 = vld [vmem:[%s3717_s10 + $0xb8] sm:$0xf0]  ;;  %v3038_v42 = vld [vmem:[%s3717_s10 + $0x70] sm:$0xf0] }
  0xb1   : > { %1778 = vmatpush.bf16.msrb.mxu0 %v2612_v58  ;;  %v2803_v58 = vld [vmem:[%s3717_s10 + $0x210] sm:$0xf] }
  0xb2   : > { %1791 = vmatpush.bf16.msrb.mxu1 %v2708_v62  ;;  %v2804_v61 = vor.u32 %v3091_v60, %v2803_v58  ;;  %v3066_v62 = vld [vmem:[%s3717_s10 + $0x154] sm:$0xf]  ;;  %1816 = vmatpush.bf16.msrb.mxu3 %v2912_v8  ;;  %v2732_v58 = vor.u32 %v3073_v55, %v2731_v54  ;;  %v3103_v60 = vld [vmem:[%s3717_s10 + $0x278] sm:$0xf0]  ;;  %v2757_v55 = vld [vmem:[%s3717_s10 + $0x1bc] sm:$0xf0] }
  0xb3   : > { %v2712_v3 = vor.u32 %v3066_v62, %v2709_v2  ;;  %v2817_v62 = vld [vmem:[%s3717_s10 + $0x234] sm:$0xf0]  ;;  %v3048_v2 = vld [vmem:[%s3717_s10 + $0xc4] sm:$0xf]  ;;  %v3078_v54 = vld [vmem:[%s3717_s10 + $0x1b4] sm:$0xf] }
  0xb4   : > { %1804 = vmatpush.bf16.msrb.mxu2 %v2804_v61  ;;  %v3093_v61 = vld [vmem:[%s3717_s10 + $0x22c] sm:$0xf] }
  0xb5   : > { %1779 = vmatpush.bf16.msrb.mxu0 %v2600_v1  ;;  %v2541_v1 = vld [vmem:[%s3717_s10 + $0xc] sm:$0xf0] }
  0xb6   : > { %1792 = vmatpush.bf16.msrb.mxu1 %v2696_v4  ;;  %v2791_v4 = vld [vmem:[%s3717_s10 + $0x1f8] sm:$0xf] }
  0xb9   : > { %1780 = vmatpush.bf16.msrb.mxu0 %v2588_v59  ;;  %v2792_v59 = vor.u32 %v3088_v5, %v2791_v4  ;;  %v2631_v5 = vld [vmem:[%s3717_s10 + $0xb0] sm:$0xf] }
  0xba   : > { %1793 = vmatpush.bf16.msrb.mxu1 %v2684_v52  ;;  %v2697_v52 = vld [vmem:[%s3717_s10 + $0x144] sm:$0xf0] }
  0xbb   : > { %v2700_v9 = vor.u32 %v3063_v7, %v2697_v52  ;;  %1805 = vmatpush.bf16.msrb.mxu2 %v2792_v59  ;;  %v2839_v7 = vld [vmem:[%s3717_s10 + $0x258] sm:$0xf]  ;;  %v3100_v52 = vld [vmem:[%s3717_s10 + $0x260] sm:$0xf0] }
  0xbc   : > { %v2840_v11 = vor.u32 %v3100_v52, %v2839_v7 }
  0xbd   : > { %1781 = vmatpush.bf16.msrb.mxu0 %v2576_v10  ;;  %v2544_v10 = vor.u32 %v3024_v0, %v2541_v1  ;;  %v2820_v1 = vor.u32 %v3093_v61, %v2817_v62 }
  0xbe   : > { %1794 = vmatpush.bf16.msrb.mxu1 %v2672_v13  ;;  %v2899_v13 = vld [vmem:[%s3717_s10 + $0x2d0] sm:$0xf] }
  0xbf   : > { %v2900_v18 = vor.u32 %v3115_v15, %v2899_v13  ;;  %1806 = vmatpush.bf16.msrb.mxu2 %v2780_v14  ;;  %v2805_v13 = vld [vmem:[%s3717_s10 + $0x21c] sm:$0xf0]  ;;  %v2632_v14 = vor.u32 %v3047_v56, %v2631_v5 }
  0xc0   : > { %v2808_v15 = vor.u32 %v3090_v12, %v2805_v13  ;;  %v3071_v12 = vld [vmem:[%s3717_s10 + $0x178] sm:$0xf0] }
  0xc1   : > { %1782 = vmatpush.bf16.msrb.mxu0 %v2564_v16  ;;  %v3060_v16 = vld [vmem:[%s3717_s10 + $0x124] sm:$0xf]  ;;  %1817 = vmatpush.bf16.msrb.mxu3 %v2900_v18 }
  0xc2   : > { %1795 = vmatpush.bf16.msrb.mxu1 %v2660_v19  ;;  %v2688_v19 = vor.u32 %v3060_v16, %v2685_v17  ;;  %v2619_v17 = vld [vmem:[%s3717_s10 + $0x98] sm:$0xf]  ;;  %v3044_v18 = vld [vmem:[%s3717_s10 + $0xa0] sm:$0xf0] }
  0xc5   : > { %1783 = vmatpush.bf16.msrb.mxu0 %v2552_v20  ;;  %v2767_v20 = vld [vmem:[%s3717_s10 + $0x1c8] sm:$0xf] }
  0xc6   : > { %1796 = vmatpush.bf16.msrb.mxu1 %v2648_v40  ;;  %v2768_v23 = vor.u32 %v3082_v21, %v2767_v20  ;;  %v2743_v40 = vld [vmem:[%s3717_s10 + $0x198] sm:$0xf]  ;;  %v3097_v20 = vld [vmem:[%s3717_s10 + $0x248] sm:$0xf0]  ;;  %v3087_v21 = vld [vmem:[%s3717_s10 + $0x1fc] sm:$0xf] }
  0xc8   : > { %1807 = vmatpush.bf16.msrb.mxu2 %v2768_v23  ;;  %v2793_v23 = vld [vmem:[%s3717_s10 + $0x204] sm:$0xf0] }
  0xc9   : > { %1784 = vmatpush.bf16.msrb.mxu0 %v2540_v25  ;;  %v3057_v25 = vld [vmem:[%s3717_s10 + $0x10c] sm:$0xf] }
  0xca   : > { %1797 = vmatpush.bf16.msrb.mxu1 %v2636_v50  ;;  %v2676_v28 = vor.u32 %v3057_v25, %v2673_v27  ;;  %v2649_v50 = vld [vmem:[%s3717_s10 + $0xe4] sm:$0xf0]  ;;  %v2913_v25 = vld [vmem:[%s3717_s10 + $0x2f4] sm:$0xf0] }
  0xcd   : > { %1829 = vmatpush.bf16.msra.mxu0 %v2628_v26  ;;  %v2888_v26 = vor.u32 %v3112_v24, %v2887_v22  ;;  %v3117_v24 = vld [vmem:[%s3717_s10 + $0x2ec] sm:$0xf] }
  0xce   : > { %1842 = vmatpush.bf16.msra.mxu1 %v2724_v57  ;;  %v2851_v57 = vld [vmem:[%s3717_s10 + $0x270] sm:$0xf] }
  0xcf   : > { %1818 = vmatpush.bf16.msrb.mxu3 %v2888_v26  ;;  %v2852_v0 = vor.u32 %v3103_v60, %v2851_v57  ;;  %v2620_v26 = vor.u32 %v3044_v18, %v2619_v17  ;;  %v3108_v57 = vld [vmem:[%s3717_s10 + $0x2a4] sm:$0xf]  ;;  %v2877_v60 = vld [vmem:[%s3717_s10 + $0x2ac] sm:$0xf0]  ;;  %v3102_v17 = vld [vmem:[%s3717_s10 + $0x274] sm:$0xf] }
  0xd0   : > { %v2880_v62 = vor.u32 %v3108_v57, %v2877_v60  ;;  %v3056_v57 = vld [vmem:[%s3717_s10 + $0x100] sm:$0xf0]  ;;  %v2655_v60 = vld [vmem:[%s3717_s10 + $0xe0] sm:$0xf] }
  0xd1   : > { %1830 = vmatpush.bf16.msra.mxu0 %v2616_v29  ;;  %v2755_v29 = vld [vmem:[%s3717_s10 + $0x1b0] sm:$0xf] }
  0xd2   : > { %1843 = vmatpush.bf16.msra.mxu1 %v2712_v3  ;;  %v2756_v33 = vor.u32 %v3079_v30, %v2755_v29  ;;  %v2637_v3 = vld [vmem:[%s3717_s10 + $0xcc] sm:$0xf0]  ;;  %v2916_v29 = vor.u32 %v3117_v24, %v2913_v25  ;;  %v2607_v30 = vld [vmem:[%s3717_s10 + $0x80] sm:$0xf] }
  0xd3   : > { %v2640_v59 = vor.u32 %v3048_v2, %v2637_v3  ;;  %v3075_v2 = vld [vmem:[%s3717_s10 + $0x19c] sm:$0xf]  ;;  %v2745_v3 = vld [vmem:[%s3717_s10 + $0x1a4] sm:$0xf0] }
  0xd4   : > { %1808 = vmatpush.bf16.msrb.mxu2 %v2756_v33 }
  0xd5   : > { %1831 = vmatpush.bf16.msra.mxu0 %v2604_v32  ;;  %v4028_v32 = vld [vmem:[%s3711_s9] sm:$0xf] }
  0xd6   : > { %1844 = vmatpush.bf16.msra.mxu1 %v2700_v9  ;;  %v474_v36 = vperm.slane %v4028_v32, 0 }
  0xd9   : > { %1832 = vmatpush.bf16.msra.mxu0 %v2592_v35  ;;  %v2876_v35 = vor.u32 %v3109_v34, %v2875_v31  ;;  %v3041_v31 = vld [vmem:[%s3717_s10 + $0x88] sm:$0xf0]  ;;  %v3084_v34 = vld [vmem:[%s3717_s10 + $0x1e4] sm:$0xf] }
  0xda   : > { %1845 = vmatpush.bf16.msra.mxu1 %v2688_v19  ;;  %v2827_v19 = vld [vmem:[%s3717_s10 + $0x240] sm:$0xf] }
  0xdb   : > { %1819 = vmatpush.bf16.msrb.mxu3 %v2876_v35  ;;  %v2828_v22 = vor.u32 %v3097_v20, %v2827_v19  ;;  %v2781_v35 = vld [vmem:[%s3717_s10 + $0x1ec] sm:$0xf0]  ;;  %v2853_v20 = vld [vmem:[%s3717_s10 + $0x27c] sm:$0xf0] }
  0xdc   : > { %v2784_v37 = vor.u32 %v3084_v34, %v2781_v35  ;;  %v2856_v24 = vor.u32 %v3102_v17, %v2853_v20 }
  0xdd   : > { %1833 = vmatpush.bf16.msra.mxu0 %v2580_v41  ;;  %v3076_v41 = vld [vmem:[%s3717_s10 + $0x1a0] sm:$0xf0] }
  0xde   : > { %1846 = vmatpush.bf16.msra.mxu1 %v2676_v28  ;;  %v2744_v45 = vor.u32 %v3076_v41, %v2743_v40  ;;  %v2796_v28 = vor.u32 %v3087_v21, %v2793_v23  ;;  %v2595_v41 = vld [vmem:[%s3717_s10 + $0x68] sm:$0xf]  ;;  %v3026_v23 = vld [vmem:[%s3717_s10 + $0x10] sm:$0xf0] }
  0xdf   : > { %1820 = vmatpush.bf16.msrb.mxu3 %v2864_v48  ;;  %v2596_v48 = vor.u32 %v3038_v42, %v2595_v41  ;;  %v3096_v41 = vld [vmem:[%s3717_s10 + $0x244] sm:$0xf]  ;;  %v2829_v42 = vld [vmem:[%s3717_s10 + $0x24c] sm:$0xf0] }
  0xe0   : > { %1809 = vmatpush.bf16.msrb.mxu2 %v2744_v45  ;;  %v3111_v45 = vld [vmem:[%s3717_s10 + $0x2bc] sm:$0xf] }
  0xe1   : > { %1834 = vmatpush.bf16.msra.mxu0 %v2568_v49  ;;  %v3051_v49 = vld [vmem:[%s3717_s10 + $0xdc] sm:$0xf] }
  0xe2   : > { %1847 = vmatpush.bf16.msra.mxu1 %v2664_v39  ;;  %v2652_v51 = vor.u32 %v3051_v49, %v2649_v50  ;;  %v2608_v39 = vor.u32 %v3041_v31, %v2607_v30  ;;  %v475_v50 = vperm.slane %v4028_v32, 1  ;;  %v3099_v30 = vld [vmem:[%s3717_s10 + $0x25c] sm:$0xf]  ;;  %v2841_v31 = vld [vmem:[%s3717_s10 + $0x264] sm:$0xf0] }
  0xe3   : > { %1821 = vmatpush.bf16.msrb.mxu3 %v2852_v0  ;;  %v2571_v0 = vld [vmem:[%s3717_s10 + $0x38] sm:$0xf] }
  0xe4   : > { %1810 = vmatpush.bf16.msrb.mxu2 %v2732_v58  ;;  %v2760_v58 = vor.u32 %v3078_v54, %v2757_v55  ;;  %v2667_v55 = vld [vmem:[%s3717_s10 + $0xf8] sm:$0xf] }
  0xe5   : > { %1835 = vmatpush.bf16.msra.mxu0 %v2556_v63 }
  0xe6   : > { %1848 = vmatpush.bf16.msra.mxu1 %v2652_v51  ;;  %v2583_v51 = vld [vmem:[%s3717_s10 + $0x50] sm:$0xf] }
  0xe7   : > { %1822 = vmatpush.bf16.msrb.mxu3 %v2840_v11  ;;  %v2727_v11 = vld [vmem:[%s3717_s10 + $0x170] sm:$0xf] }
  0xe8   : > { %1855 = vmatpush.bf16.msra.mxu2 %v2820_v1  ;;  %v3032_v1 = vld [vmem:[%s3717_s10 + $0x40] sm:$0xf0]  ;;  %v2728_v25 = vor.u32 %v3071_v12, %v2727_v11 }
  0xe9   : > { %1836 = vmatpush.bf16.msra.mxu0 %v2544_v10  ;;  %v982_v43 = vpop.f32.mrf.mxu0  ;;  %v2572_v56 = vor.u32 %v3032_v1, %v2571_v0  ;;  %v477_v0 = vperm.slane %v4028_v32, 3 }
  0xea   : > { %v995_v44 = vpop.f32.mrf.mxu1  ;;  %v983_v47 = vadd.f32 %v982_v43, %v474_v36  ;;  %1849 = vmatpush.bf16.msra.mxu1 %v2640_v59  ;;  %v3114_v36 = vld [vmem:[%s3717_s10 + $0x2d4] sm:$0xf]  ;;  %v3081_v43 = vld [vmem:[%s3717_s10 + $0x1cc] sm:$0xf]  ;;  %v2748_v59 = vor.u32 %v3075_v2, %v2745_v3 }
  0xeb   : > { %1823 = vmatpush.bf16.msrb.mxu3 %v2828_v22  ;;  %v2904_v40 = vor.u32 %v3114_v36, %v2901_v38  ;;  %v2547_v22 = vld [vmem:[%s3717_s10 + $0x8] sm:$0xf]  ;;  %v2844_v36 = vor.u32 %v3099_v30, %v2841_v31  ;;  %v2907_v30 = vld [vmem:[%s3717_s10 + $0x2d8] sm:$0xf]  ;;  %v3116_v31 = vld [vmem:[%s3717_s10 + $0x2e0] sm:$0xf0] }
  0xec   : > { %v996_v53 = vadd.f32 %v995_v44, %v983_v47  ;;  %1856 = vmatpush.bf16.msra.mxu2 %v2808_v15  ;;  %v2769_v44 = vld [vmem:[%s3717_s10 + $0x1d4] sm:$0xf0]  ;;  %v2889_v47 = vld [vmem:[%s3717_s10 + $0x2c4] sm:$0xf0]  ;;  %v2733_v15 = vld [vmem:[%s3717_s10 + $0x18c] sm:$0xf0]  ;;  %v2548_v34 = vor.u32 %v3026_v23, %v2547_v22 }
  0xed   : > { %v2772_v46 = vor.u32 %v3081_v43, %v2769_v44  ;;  %v2892_v49 = vor.u32 %v3111_v45, %v2889_v47  ;;  %v2832_v43 = vor.u32 %v3096_v41, %v2829_v42  ;;  %v3062_v47 = vld [vmem:[%s3717_s10 + $0x130] sm:$0xf0]  ;;  %v3119_v22 = vld [vmem:[%s3717_s10 + $0x2f8] sm:$0xf0]  ;;  %v2763_v42 = vld [vmem:[%s3717_s10 + $0x1b8] sm:$0xf] }
  0xef   : > { %1868 = vmatpush.bf16.msra.mxu3 %v2916_v29  ;;  %v3068_v29 = vld [vmem:[%s3717_s10 + $0x160] sm:$0xf0] }
  0xf0   : > { %1857 = vmatpush.bf16.msra.mxu2 %v2796_v28 }
  0xf1   : > { %v1008_v63 = vpop.f32.mrf.mxu2  ;;  %v984_v9 = vpop.f32.mrf.mxu0 }
  0xf2   : > { %v1009_v4 = vadd.f32 %v1008_v63, %v996_v53  ;;  %v997_v10 = vpop.f32.mrf.mxu1  ;;  %v3035_v53 = vld [vmem:[%s3717_s10 + $0x58] sm:$0xf0]  ;;  %v3029_v9 = vld [vmem:[%s3717_s10 + $0x28] sm:$0xf0] }
  0xf3   : > { %v4050_v6 = vpop.f32.mrf.mxu3  ;;  %1869 = vmatpush.bf16.msra.mxu3 %v2904_v40  ;;  %v2584_v61 = vor.u32 %v3035_v53, %v2583_v51  ;;  %v3065_v40 = vld [vmem:[%s3717_s10 + $0x148] sm:$0xf0]  ;;  %v3059_v51 = vld [vmem:[%s3717_s10 + $0x118] sm:$0xf0]  ;;  %v476_v53 = vperm.slane %v4028_v32, 2 }
  0xf4   : > { %v1129_v8 = vmax.f32 %v1009_v4, 0.0  ;;  %1858 = vmatpush.bf16.msra.mxu2 %v2784_v37  ;;  %v1022_v63 = vadd.f32 %v4050_v6, %v475_v50  ;;  %v3105_v4 = vld [vmem:[%s3717_s10 + $0x28c] sm:$0xf]  ;;  %v2865_v6 = vld [vmem:[%s3717_s10 + $0x294] sm:$0xf0] }
  0xf5   : > { %v2868_v10 = vor.u32 %v3105_v4, %v2865_v6  ;;  %v2679_v50 = vld [vmem:[%s3717_s10 + $0x110] sm:$0xf]  ;;  %v2811_v32 = vld [vmem:[%s3717_s10 + $0x218] sm:$0xf] }
  0xf6   : > { %v4056_v16 = vpack.c.bf16 %v1129_v8, %v1129_v8  ;;  %v2559_v8 = vld [vmem:[%s3717_s10 + $0x20] sm:$0xf]  ;;  %v2680_v54 = vor.u32 %v3059_v51, %v2679_v50  ;;  %v2823_v4 = vld [vmem:[%s3717_s10 + $0x230] sm:$0xf]  ;;  %v3107_v51 = vld [vmem:[%s3717_s10 + $0x298] sm:$0xf0] }
  0xf7   : > { %1870 = vmatpush.bf16.msra.mxu3 %v2892_v49  ;;  %v2560_v18 = vor.u32 %v3029_v9, %v2559_v8  ;;  %v2871_v50 = vld [vmem:[%s3717_s10 + $0x290] sm:$0xf] }
  0xf8   : > { %1785 = vmatmul.bf16.vlgmr.msrb.gmra.mxu0 %v4056_v16  ;;  %1859 = vmatpush.bf16.msra.mxu2 %v2772_v46  ;;  %v2691_v46 = vld [vmem:[%s3717_s10 + $0x128] sm:$0xf] }
  0xf9   : > { %1881 = vmatpush.bf16.msrb.mxu0 %v2632_v14  ;;  %v1010_v27 = vpop.f32.mrf.mxu2  ;;  %v3072_v14 = vld [vmem:[%s3717_s10 + $0x184] sm:$0xf]  ;;  %v2692_v49 = vor.u32 %v3062_v47, %v2691_v46 }
  0xfa   : > { %v2736_v19 = vor.u32 %v3072_v14, %v2733_v15 }
  0xfb   : > { %v1023_v33 = vpop.f32.mrf.mxu3  ;;  %1871 = vmatpush.bf16.msra.mxu3 %v2880_v62 }
  0xfc   : > { %1860 = vmatpush.bf16.msra.mxu2 %v2760_v58  ;;  %v2668_v58 = vor.u32 %v3056_v57, %v2667_v55  ;;  %v2739_v55 = vld [vmem:[%s3717_s10 + $0x188] sm:$0xf]  ;;  %v3074_v57 = vld [vmem:[%s3717_s10 + $0x190] sm:$0xf0] }
  0xfd   : > { %1882 = vmatpush.bf16.msrb.mxu0 %v2620_v26  ;;  %v2715_v26 = vld [vmem:[%s3717_s10 + $0x158] sm:$0xf] }
  0xfe   : > { %v2716_v38 = vor.u32 %v3068_v29, %v2715_v26  ;;  %v2787_v26 = vld [vmem:[%s3717_s10 + $0x1e8] sm:$0xf] }
  0xff   : > { %1872 = vmatpush.bf16.msra.mxu3 %v2868_v10  ;;  %v3092_v10 = vld [vmem:[%s3717_s10 + $0x220] sm:$0xf0] }
 0x100   : > { %1861 = vmatpush.bf16.msra.mxu2 %v2748_v59  ;;  %v3050_v59 = vld [vmem:[%s3717_s10 + $0xd0] sm:$0xf0]  ;;  %v2812_v15 = vor.u32 %v3092_v10, %v2811_v32 }
 0x101   : > { %1883 = vmatpush.bf16.msrb.mxu0 %v2608_v39  ;;  %v2703_v39 = vld [vmem:[%s3717_s10 + $0x140] sm:$0xf] }
 0x102   : > { %v2704_v44 = vor.u32 %v3065_v40, %v2703_v39  ;;  %v3113_v39 = vld [vmem:[%s3717_s10 + $0x2c8] sm:$0xf0] }
 0x103   : > { %1873 = vmatpush.bf16.msra.mxu3 %v2856_v24 }
 0x104   : > { %1862 = vmatpush.bf16.msra.mxu2 %v2736_v19  ;;  %v3089_v19 = vld [vmem:[%s3717_s10 + $0x208] sm:$0xf0] }
 0x105   : > { %1884 = vmatpush.bf16.msrb.mxu0 %v2596_v48 }
 0x107   : > { %1874 = vmatpush.bf16.msra.mxu3 %v2844_v36  ;;  %v2775_v36 = vld [vmem:[%s3717_s10 + $0x1d0] sm:$0xf] }
 0x108   : > { %1837 = vmatmul.bf16.vlgmr.msra.gmra.mxu0 %v4056_v16 }
 0x109   : > { %v1034_v5 = vpop.f32.mrf.mxu0  ;;  %1885 = vmatpush.bf16.msrb.mxu0 %v2584_v61  ;;  %v3053_v61 = vld [vmem:[%s3717_s10 + $0xe8] sm:$0xf0] }
 0x10a   : > { %v1035_v7 = vadd.f32 %v1034_v5, %v1022_v63  ;;  %v1047_v52 = vpop.f32.mrf.mxu1  ;;  %v2656_v3 = vor.u32 %v3053_v61, %v2655_v60  ;;  %v3095_v5 = vld [vmem:[%s3717_s10 + $0x238] sm:$0xf0]  ;;  %v2740_v60 = vor.u32 %v3074_v57, %v2739_v55 }
 0x10b   : > { %1875 = vmatpush.bf16.msra.mxu3 %v2832_v43  ;;  %v3080_v43 = vld [vmem:[%s3717_s10 + $0x1c0] sm:$0xf0] }
 0x10c   : > { %v1048_v13 = vadd.f32 %v1047_v52, %v1035_v7  ;;  %v2824_v52 = vor.u32 %v3095_v5, %v2823_v4  ;;  %v2764_v46 = vor.u32 %v3080_v43, %v2763_v42 }
 0x10d   : > { %1886 = vmatpush.bf16.msrb.mxu0 %v2572_v56  ;;  %v2643_v56 = vld [vmem:[%s3717_s10 + $0xc8] sm:$0xf] }
 0x10e   : > { %v1130_v21 = vmax.f32 %v1048_v13, 0.0  ;;  %v2644_v9 = vor.u32 %v3050_v59, %v2643_v56 }
 0x110   : > { %v4105_v27 = vpack.c.bf16 %v1130_v21, %v1130_v21  ;;  %v2919_v21 = vld [vmem:[%s3717_s10 + $0x2f0] sm:$0xf] }
 0x111   : > { %v1060_v28 = vpop.f32.mrf.mxu2  ;;  %1887 = vmatpush.bf16.msrb.mxu0 %v2560_v18  ;;  %v1036_v35 = vpop.f32.mrf.mxu0  ;;  %v2799_v18 = vld [vmem:[%s3717_s10 + $0x200] sm:$0xf] }
 0x112   : > { %1798 = vmatmul.bf16.vlgmr.msrb.gmra.mxu1 %v4105_v27  ;;  %v1049_v37 = vpop.f32.mrf.mxu1  ;;  %v2800_v24 = vor.u32 %v3089_v19, %v2799_v18  ;;  %v2908_v35 = vor.u32 %v3116_v31, %v2907_v30 }
 0x113   : > { %v1073_v33 = vpop.f32.mrf.mxu3  ;;  %1894 = vmatpush.bf16.msrb.mxu1 %v2728_v25  ;;  %v2920_v25 = vor.u32 %v3119_v22, %v2919_v21  ;;  %v3083_v37 = vld [vmem:[%s3717_s10 + $0x1d8] sm:$0xf0] }
 0x114   : > { %v2776_v40 = vor.u32 %v3083_v37, %v2775_v36 }
 0x115   : > { %1888 = vmatpush.bf16.msrb.mxu0 %v2548_v34 }
 0x117   : > { %1895 = vmatpush.bf16.msrb.mxu1 %v2716_v38  ;;  %v2895_v38 = vld [vmem:[%s3717_s10 + $0x2c0] sm:$0xf] }
 0x118   : > { %1889 = vmatmul.bf16.vlgmr.msrb.gmra.mxu0 %v4056_v16  ;;  %v1061_v16 = vadd.f32 %v1060_v28, %v476_v53  ;;  %v3086_v28 = vld [vmem:[%s3717_s10 + $0x1f0] sm:$0xf0]  ;;  %v2896_v41 = vor.u32 %v3113_v39, %v2895_v38 }
 0x119   : > { %v1062_v45 = vpop.f32.mrf.mxu2 }
 0x11a   : > { %v1074_v62 = vadd.f32 %v1073_v33, %v1061_v16  ;;  %v3110_v45 = vld [vmem:[%s3717_s10 + $0x2b0] sm:$0xf0]  ;;  %v2859_v16 = vld [vmem:[%s3717_s10 + $0x278] sm:$0xf] }
 0x11b   : > { %v1075_v48 = vpop.f32.mrf.mxu3  ;;  %1896 = vmatpush.bf16.msrb.mxu1 %v2704_v44  ;;  %v2883_v44 = vld [vmem:[%s3717_s10 + $0x2a8] sm:$0xf] }
 0x11c   : > { %v2884_v47 = vor.u32 %v3110_v45, %v2883_v44  ;;  %v2751_v48 = vld [vmem:[%s3717_s10 + $0x1a0] sm:$0xf] }
 0x11f   : > { %1897 = vmatpush.bf16.msrb.mxu1 %v2692_v49  ;;  %v3077_v49 = vld [vmem:[%s3717_s10 + $0x1a8] sm:$0xf0] }
 0x120   : > { %v2752_v53 = vor.u32 %v3077_v49, %v2751_v48 }
 0x122   : > { %1850 = vmatmul.bf16.vlgmr.msra.gmra.mxu1 %v4105_v27 }
 0x123   : > { %1898 = vmatpush.bf16.msrb.mxu1 %v2680_v54  ;;  %v2872_v54 = vor.u32 %v3107_v51, %v2871_v50 }
 0x127   : > { %1899 = vmatpush.bf16.msrb.mxu1 %v2668_v58  ;;  %v3104_v58 = vld [vmem:[%s3717_s10 + $0x280] sm:$0xf0] }
 0x128   : > { %v2860_v61 = vor.u32 %v3104_v58, %v2859_v16 }
 0x129   : > { %v1086_v63 = vpop.f32.mrf.mxu0 }
 0x12a   : > { %v1087_v1 = vadd.f32 %v1086_v63, %v1074_v62  ;;  %v1099_v2 = vpop.f32.mrf.mxu1  ;;  %v2847_v62 = vld [vmem:[%s3717_s10 + $0x260] sm:$0xf]  ;;  %v3101_v63 = vld [vmem:[%s3717_s10 + $0x268] sm:$0xf0] }
 0x12b   : > { %v1100_v7 = vadd.f32 %v1099_v2, %v477_v0  ;;  %1900 = vmatpush.bf16.msrb.mxu1 %v2656_v3  ;;  %v2848_v0 = vor.u32 %v3101_v63, %v2847_v62  ;;  %v3098_v2 = vld [vmem:[%s3717_s10 + $0x250] sm:$0xf0] }
 0x12c   : > { %v1131_v6 = vmax.f32 %v1087_v1, 0.0  ;;  %v2835_v1 = vld [vmem:[%s3717_s10 + $0x248] sm:$0xf] }
 0x12d   : > { %v2836_v3 = vor.u32 %v3098_v2, %v2835_v1 }
 0x12e   : > { %v4131_v8 = vpack.c.bf16 %v1131_v6, %v1131_v6 }
 0x12f   : > { %1901 = vmatpush.bf16.msrb.mxu1 %v2644_v9 }
 0x130   : > { %1811 = vmatmul.bf16.vlgmr.msrb.gmra.mxu2 %v4131_v8 }
 0x131   : > { %v1112_v11 = vpop.f32.mrf.mxu2  ;;  %v1088_v14 = vpop.f32.mrf.mxu0  ;;  %1907 = vmatpush.bf16.msrb.mxu2 %v2824_v52 }
 0x132   : > { %v1113_v12 = vadd.f32 %v1112_v11, %v1100_v7  ;;  %v1125_v13 = vpop.f32.mrf.mxu3  ;;  %v1101_v17 = vpop.f32.mrf.mxu1  ;;  %1902 = vmatmul.bf16.vlgmr.msrb.gmra.mxu1 %v4105_v27  ;;  %v2788_v27 = vor.u32 %v3086_v28, %v2787_v26 }
 0x134   : > { %v1126_v20 = vadd.f32 %v1125_v13, %v1113_v12 }
 0x135   : > { %1908 = vmatpush.bf16.msrb.mxu2 %v2812_v15 }
 0x136   : > { %v1132_v23 = vmax.f32 %v1126_v20, 0.0 }
 0x138   : > { %v1136_v29 = vpack.c.bf16 %v1132_v23, %v1132_v23 }
 0x139   : > { %v1114_v33 = vpop.f32.mrf.mxu2  ;;  %1909 = vmatpush.bf16.msrb.mxu2 %v2800_v24 }
 0x13a   : > { %v1127_v34 = vpop.f32.mrf.mxu3  ;;  %1824 = vmatmul.bf16.vlgmr.msrb.gmra.mxu3 %v1136_v29 }
 0x13b   : > { %1920 = vmatpush.bf16.msrb.mxu3 %v2920_v25 }
 0x13d   : > { %1910 = vmatpush.bf16.msrb.mxu2 %v2788_v27 }
 0x13f   : > { %1921 = vmatpush.bf16.msrb.mxu3 %v2908_v35 }
 0x140   : > { %1863 = vmatmul.bf16.vlgmr.msra.gmra.mxu2 %v4131_v8 }
 0x141   : > { %1911 = vmatpush.bf16.msrb.mxu2 %v2776_v40 }
 0x143   : > { %1922 = vmatpush.bf16.msrb.mxu3 %v2896_v41 }
 0x145   : > { %1912 = vmatpush.bf16.msrb.mxu2 %v2764_v46 }
 0x147   : > { %1923 = vmatpush.bf16.msrb.mxu3 %v2884_v47 }
 0x149   : > { %1913 = vmatpush.bf16.msrb.mxu2 %v2752_v53 }
 0x14a   : > { %1876 = vmatmul.bf16.vlgmr.msra.gmra.mxu3 %v1136_v29 }
 0x14b   : > { %1924 = vmatpush.bf16.msrb.mxu3 %v2872_v54 }
 0x14d   : > { %1914 = vmatpush.bf16.msrb.mxu2 %v2740_v60 }
 0x14f   : > { %1925 = vmatpush.bf16.msrb.mxu3 %v2860_v61 }
 0x150   : > { %1915 = vmatmul.bf16.vlgmr.msrb.gmra.mxu2 %v4131_v8 }
 0x153   : > { %1926 = vmatpush.bf16.msrb.mxu3 %v2848_v0 }
 0x157   : > { %1927 = vmatpush.bf16.msrb.mxu3 %v2836_v3 }
 0x15a   : > { %1928 = vmatmul.bf16.vlgmr.msrb.gmra.mxu3 %v1136_v29 }
 0x175   : > { %v1786_v4 = vpop.f32.mrf.mxu0 }
 0x17d   : > { %v1788_v5 = vpop.f32.mrf.mxu0 }
 0x185   : > { %v1838_v56 = vpop.f32.mrf.mxu0 }
 0x18d   : > { %v1840_v59 = vpop.f32.mrf.mxu0 }
 0x18f   : > { %v1799_v6 = vpop.f32.mrf.mxu1 }
 0x190   : > { %v1800_v7 = vadd.f32 %v1799_v6, %v1786_v4 }
 0x195   : > { %v1890_v52 = vpop.f32.mrf.mxu0 }
 0x197   : > { %v1801_v9 = vpop.f32.mrf.mxu1 }
 0x19d   : > { %v1892_v32 = vpop.f32.mrf.mxu0 }
 0x19f   : > { %v1851_v10 = vpop.f32.mrf.mxu1 }
 0x1a0   : > { %v1852_v21 = vadd.f32 %v1851_v10, %v1838_v56 }
 0x1a7   : > { %v1853_v11 = vpop.f32.mrf.mxu1 }
 0x1af   : > { %v1903_v12 = vpop.f32.mrf.mxu1 }
 0x1b0   : > { %v1904_v29 = vadd.f32 %v1903_v12, %v1890_v52 }
 0x1b3   : > { %v1812_v13 = vpop.f32.mrf.mxu2 }
 0x1b4   : > { %v1813_v15 = vadd.f32 %v1812_v13, %v1800_v7 }
 0x1b7   : > { %v1905_v14 = vpop.f32.mrf.mxu1 }
 0x1bb   : > { %v1814_v8 = vpop.f32.mrf.mxu2 }
 0x1bd   : > { %v1825_v17 = vpop.f32.mrf.mxu3 }
 0x1be   : > { %v1826_v18 = vadd.f32 %v1825_v17, %v1813_v15 }
 0x1c3   : > { %v1864_v19 = vpop.f32.mrf.mxu2 }
 0x1c4   : > { %v1865_v22 = vadd.f32 %v1864_v19, %v1852_v21 }
 0x1c5   : > { %v1827_v20 = vpop.f32.mrf.mxu3 }
 0x1cb   : > { %v1866_v23 = vpop.f32.mrf.mxu2 }
 0x1cd   : > { %v1877_v24 = vpop.f32.mrf.mxu3 }
 0x1ce   : > { %v1878_v25 = vadd.f32 %v1877_v24, %v1865_v22 }
 0x1d3   : > { %v1916_v26 = vpop.f32.mrf.mxu2 }
 0x1d4   : > { %v1917_v30 = vadd.f32 %v1916_v26, %v1904_v29 }
 0x1d5   : > { %v1879_v28 = vpop.f32.mrf.mxu3 }
 0x1db   : > { %v1918_v31 = vpop.f32.mrf.mxu2 }
 0x1dd   : > { %v1929_v33 = vpop.f32.mrf.mxu3 }
 0x1de   : > { %v1930_v34 = vadd.f32 %v1929_v33, %v1917_v30 }
 0x1e1   : > { %1936 = sbr.rel (%p2921_p9) target bundleno = 489 (0x1e9), region = 60 }
 0x1e5   : > { %v1931_v27 = vpop.f32.mrf.mxu3 }
 0x1e6   : > { %1937 = vst [vmem:[%s4168_s7] sm:$0xff] %v1826_v18 }
 0x1e7   : > { %1938 = vst [vmem:[%s4168_s7 + $0x8] sm:$0xff] %v1878_v25 }
 0x1e8   : > { %1939 = vst [vmem:[%s4168_s7 + $0x10] sm:$0xff] %v1930_v34 }
 0x1e9 PF: > { %s4284_s17 = sld [smem:[#allocation18_spill]] }
 0x1ef   : > { %p2922_p11 = scmp.eq.s32.totalorder %s4284_s17, 0 }
 0x1f1   : > { %1943 = sbr.rel (%p2922_p11) target bundleno = 508 (0x1fc), region = 64 }
 0x1f6   : > { %v1944_v35 = vld [vmem:[%s4168_s7] sm:$0xff]  ;;  %v1945_v36 = vld [vmem:[%s4168_s7 + $0x8] sm:$0xff]  ;;  %v1946_v37 = vld [vmem:[%s4168_s7 + $0x10] sm:$0xff] }
 0x1f7   : > { %v1947_v38 = vadd.f32 %v1944_v35, %v1826_v18  ;;  %v1948_v39 = vadd.f32 %v1945_v36, %v1878_v25  ;;  %v1949_v40 = vadd.f32 %v1946_v37, %v1930_v34 }
 0x1f9   : > { %1950 = vst [vmem:[%s4168_s7] sm:$0xff] %v1947_v38 }
 0x1fa   : > { %1951 = vst [vmem:[%s4168_s7 + $0x8] sm:$0xff] %v1948_v39 }
 0x1fb   : > { %1952 = vst [vmem:[%s4168_s7 + $0x10] sm:$0xff] %v1949_v40 }
 0x1fc PF: > { %s4285_s12 = sld [smem:[#allocation18_spill]] }
 0x202   : > { %p2923_p12 = scmp.ne.s32.totalorder %s4285_s12, 2 }
 0x204   : > { %1956 = sbr.rel (%p2923_p12) target bundleno = 530 (0x212), region = 68 }
 0x209   : > { %v1957_v41 = vld [vmem:[%s4168_s7] sm:$0xff]  ;;  %v1958_v43 = vld [vmem:[%s4168_s7 + $0x8] sm:$0xff]  ;;  %v1959_v46 = vld [vmem:[%s4168_s7 + $0x10] sm:$0xff] }
 0x20a   : > { %v1960_v42 = vld [vmem:[#allocation8] sm:$0x7] }
 0x20b   : > { %v1962_v44 = vperm.slane %v1960_v42, 0  ;;  %v1963_v45 = vperm.slane %v1960_v42, 1  ;;  %v1964_v47 = vperm.slane %v1960_v42, 2 }
 0x20d   : > { %v1968_v48 = vadd.f32 %v1962_v44, %v1957_v41  ;;  %v1969_v49 = vadd.f32 %v1963_v45, %v1958_v43  ;;  %v1970_v50 = vadd.f32 %v1964_v47, %v1959_v46 }
 0x20f   : > { %1971 = vst [vmem:[%s4168_s7] sm:$0xff] %v1968_v48 }
 0x210   : > { %1972 = vst [vmem:[%s4168_s7 + $0x8] sm:$0xff] %v1969_v49 }
 0x211   : > { %1973 = vst [vmem:[%s4168_s7 + $0x10] sm:$0xff] %v1970_v50 }
 0x212 PF: > { %s3126_s27 = smul.u32 24, %s3493_s25  ;;  %s1988_s30 = sshll.u32 %s4168_s7, 4  ;;  %s1989_s30 = int_to_ptr.vmem [resolvable:$true] %s1988_s30 }
 0x213   : > { %s4287_s4 = sld [smem:[#allocation29_spill]]  ;;  %s1975_s5 = scalar_lea.sflag [#allocation4], %s363_s15 }
 0x219   : > { %s1986_s18 = scalar_lea.hbm %s4287_s4, %s3126_s27  ;;  %s3395_s25 = scalar_lea.hbm %s4287_s4, 48 }
 0x21a   : > { %s1990_s20 = sshll.u32 %s1986_s18, 4  ;;  %s1991_s20 = int_to_ptr.hbm [resolvable:$true] %s1990_s20 }
 0x21b   : > { %s3389_s24 = sshra.s32 %s1991_s20, 4  ;;  %s3390_s24 = int_to_ptr.hbm [resolvable:$true] %s3389_s24 }
 0x21c   : > { %s3391_s28 = scalar_lea.hbm %s3390_s24, 24  ;;  %p3396_p2 = scmp.lt.s32.totalorder %s3390_s24, %s4287_s4 }
 0x21d   : > { %p3392_p13 = scmp.ne.s32.totalorder %s3390_s24, %s3391_s28  ;;  %p3397_p4 = scmp.lt.s32.totalorder %s3395_s25, %s3391_s28 }
 0x21f   : > { %p3393_p0 = pnand %p3392_p13, %p3664_p3  ;;  %p3398_p6 = por %p3397_p4, %p3396_p2 }
 0x221   : > { %p3394_p1 = pneg %p3393_p0 }
 0x223   : > { %p3399_p8 = pnand %p3398_p6, %p3394_p1 }
 0x225   : > { %3402 = shalt.err (!%p3399_p8)
}
 0x226   : > { %3137 = dma.vmem_to_hbm [thread:$0]  (%p3664_p3), %s1989_s30, 384, %s1991_s20, %s1975_s5  }
 0x227 PF: > { %s4288_s15 = sld [smem:[#allocation20_spill]] }
 0x228   : > { %s4289_s16 = sld [smem:[#allocation15_spill]] }
 0x22d   : > { %p3160_p10 = scmp.ge.s32.totalorder %s4288_s15, 2 }
 0x22e   : > { %s2002_s21 = sand.u32 1, %s4289_s16  }
 0x22f   : > { %p3154_p7 = pnand %p3160_p10, %p3669_p5  ;;  %s2003_s6 = scalar_lea.sflag [#allocation4], %s2002_s21 }
 0x231   : > { %p3155_p9 = pneg %p3154_p7 }
 0x233   : > { %3460 = dma.done.wait (%p3155_p9), %s2003_s6, 384  }
 0x234   : > { %3462 = vsyncadd (%p3155_p9), %s2003_s6, 4294966912  ;;  %s25_s28 = sadd.s32 1, %s4288_s15   ;;  %s4291_s7 = sld [smem:[#allocation16_spill]] }
 0x235   : > { %p22_p11 = scmp.ge.s32.totalorder %s25_s28, 8   ;;  %s4292_s20 = sld [smem:[#allocation24_spill]] }
 0x236   : > { %s4293_s8 = sld [smem:[#allocation17_spill]]  ;;  %s4298_s18 = smov %s3469_s19 }
 0x237   : > { %s4294_s23 = sld [smem:[#allocation23_spill]]  ;;  %s4300_s21 = smov %s3481_s22 }
 0x238   : > { %s4295_s25 = sld [smem:[#allocation19_spill]]  ;;  %s4302_s24 = smov %s3497_s26 }
 0x239   : > { %s4296_s17 = sld [smem:[#allocation21_spill]] }
 0x23a   : > { %s4297_s27 = sld [smem:[#allocation22_spill]]  ;;  %s4299_s19 = smov %s4291_s7 }
 0x23b   :  { %24 = sbr.rel (!%p22_p11) target bundleno = 16 (0x10), region = 128 }
 0x23c   : > { %s4301_s22 = smov %s4293_s8 }
 0x23f   : > { %s4303_s26 = smov %s4296_s17 }
 0x240   :  { %2009 = vsyncpa [#allocation3], 1 }
 0x241   :  { %2011 = vsyncpa [#allocation3 + $0x1], 1 }
 0x242   :  { %2012 = vsyncpa [#allocation6], 1 }
 0x243   :  { %2014 = vsyncpa [#allocation6 + $0x1], 1 }
 0x244   :  { %2015 = vsyncpa [#allocation9], 1 }
 0x245   :  { %2016 = vsyncpa [#allocation4], 1 }
 0x246   :  { %2018 = vsyncpa [#allocation4 + $0x1], 1 }

</bundles_post_ra>
